<compile_context>
chip_gen: v6e
topology: v6e:2x2x1
jax: 0.10.0
libtpu: 0.0.40
codegen_flags: <defaults>
</compile_context>

<pallas_src>
import math
import jax
import jax.numpy as jnp
from jax.experimental import pallas as pl
from jax.experimental.pallas import tpu as pltpu

D1 = 3        # input point dims (xyz)
HID = 64      # backbone hidden width
D2 = 256      # backbone output / attention width


# ------------------------------------------------------------------ kernels

def _backbone_qkv_kernel(x_ref, w1_ref, b1_ref, w2_ref, b2_ref, wqkv_ref,
                         q_ref, k_ref, v_ref):
    """grid = (B, P // TP); both axes parallel.

    x_ref:   (1, TP, D1) f32
    w1/b1:   f32 (first layer done on the VPU: K=3 is too shallow for the MXU)
    w2/wqkv: bf16 MXU operands (attention scale pre-folded into the wq slice)
    q/k/v:   (1, TP, D2) bf16 row tiles of the projected features
    """
    x = x_ref[0]                                        # (TP, D1) f32
    h = x[:, 0:1] * w1_ref[0:1, :]
    for d in range(1, x.shape[1]):                      # D1 == 3, unrolled
        h = h + x[:, d:d + 1] * w1_ref[d:d + 1, :]
    h = jnp.maximum(h + b1_ref[...], 0.0)               # (TP, HID) f32

    f = jnp.dot(h.astype(jnp.bfloat16), w2_ref[...],
                preferred_element_type=jnp.float32)
    f = jnp.maximum(f + b2_ref[...], 0.0)               # (TP, D2) f32

    # One wide MXU pass for Q | K | V.
    qkv = jnp.dot(f.astype(jnp.bfloat16), wqkv_ref[...],
                  preferred_element_type=jnp.float32)   # (TP, 3*D2) f32
    q_ref[0] = qkv[:, 0:D2].astype(q_ref.dtype)
    k_ref[0] = qkv[:, D2:2 * D2].astype(k_ref.dtype)
    v_ref[0] = qkv[:, 2 * D2:3 * D2].astype(v_ref.dtype)


def _attention_kernel(q_ref, k_ref, v_ref, out_ref):
    """grid = (B, P // TQ); both axes parallel (K/V re-streamed per batch).

    q_ref: (1, TQ, D2) bf16, k/v_ref: (1, P, D2) bf16, out_ref: (1, TQ, D2) f32.
    The 1/sqrt(D2) scale is folded into wq on the host.  Softmax math is f32
    (v5e's VPU/EUP have no bf16 path); normalization is deferred to the
    (TQ, D2) result instead of the (TQ, P) probability strip.
    """
    q = q_ref[0]
    k = k_ref[0]
    v = v_ref[0]

    s = jax.lax.dot_general(q, k, (((1,), (1,)), ((), ())),
                            preferred_element_type=jnp.float32)   # (TQ, P)
    m = jnp.max(s, axis=-1, keepdims=True)
    p = jnp.exp(s - m)                                  # values in (0, 1]
    row_sum = jnp.sum(p, axis=-1, keepdims=True)        # (TQ, 1) f32

    out = jnp.dot(p.astype(jnp.bfloat16), v,
                  preferred_element_type=jnp.float32)   # (TQ, D2) f32
    out = out * pl.reciprocal(row_sum, approx=True)     # deferred normalize
    out_ref[0] = out.astype(out_ref.dtype)


# ------------------------------------------------------------------ wrapper

def _full_spec(shape):
    n = len(shape)
    return pl.BlockSpec(shape, lambda b, t, _n=n: (0,) * _n)


def _row_tile(p, cap):
    """Largest divisor of p that is a multiple of 8 and <= cap (or p itself)."""
    if p <= cap:
        return p
    for d in range(min(cap, p), 7, -1):
        if p % d == 0 and d % 8 == 0:
            return d
    return 8


def _vmem_limit(need_bytes, cap_bytes):
    """Budget from the actual footprint, clamped below physical VMEM."""
    return min(max(2 * need_bytes, 32 * 1024 * 1024), int(0.9 * cap_bytes))


def search_area_feat_extraction(x, params):
    """x: [B, D1, P] (NCW, as in the PyTorch module).

    Returns (xyz[B, P, 3], att_feat[B, P, D2], sample_idxs[B, D2]),
    matching the 'dgn' branch of SearchAreaFeatExtraction.forward.
    """
    B, d1, P = x.shape
    assert d1 == D1
    assert P % 8 == 0, "P must be a multiple of 8 for TPU sublane tiling"

    # Per-generation VMEM capacity drives the tile caps and vmem budgets.
    try:
        vmem_cap = int(pltpu.get_tpu_info().vmem_capacity_bytes)
    except Exception:                                    # pragma: no cover
        vmem_cap = 64 * 1024 * 1024
    big_vmem = vmem_cap >= 96 * 1024 * 1024              # v5e/v6e: 128 MiB
    tq_cap = 1024 if big_vmem else 256                   # v7x (64 MiB): 256
    tp_cap = 1024 if big_vmem else 512

    TP = _row_tile(P, tp_cap)                            # backbone row tile
    TQ = _row_tile(P, tq_cap)                            # attention query tile

    # Single transpose to the kernel layout; xyz is just a slice of it.
    x_bpc = jnp.transpose(x, (0, 2, 1))                  # [B, P, D1]
    xyz = x_bpc[..., :3]                                 # == x[:, :3, :].permute(0,2,1)

    w1 = params["w1"]                                    # (D1, HID) f32 (VPU)
    b1 = params["b1"]                                    # (1, HID)  f32
    w2 = params["w2"].astype(jnp.bfloat16)               # (HID, D2) bf16 (MXU)
    b2 = params["b2"]                                    # (1, D2)   f32
    # Fold the 1/sqrt(D2) attention scale into wq; fuse Q|K|V into one matmul.
    wqkv = jnp.concatenate(
        [params["wq"] * (1.0 / math.sqrt(D2)), params["wk"], params["wv"]],
        axis=1).astype(jnp.bfloat16)                     # (D2, 3*D2) bf16

    weight_bytes = (4 * (D1 * HID + HID + D2)
                    + 2 * (HID * D2 + D2 * 3 * D2))

    # ---- pass 1: backbone (pointwise MLP) + fused QKV projection ----------
    p1_need = (2 * (4 * TP * D1 + 3 * 2 * TP * D2)       # double-buffered IO
               + weight_bytes
               + 4 * TP * (HID + D2 + 3 * D2))           # f32 intermediates
    q_all, k_all, v_all = pl.pallas_call(
        _backbone_qkv_kernel,
        out_shape=tuple(jax.ShapeDtypeStruct((B, P, D2), jnp.bfloat16)
                        for _ in range(3)),
        grid_spec=pltpu.PrefetchScalarGridSpec(
            num_scalar_prefetch=0,
            grid=(B, P // TP),
            in_specs=[
                pl.BlockSpec((1, TP, D1), lambda b, t: (b, t, 0)),
                _full_spec(w1.shape), _full_spec(b1.shape),
                _full_spec(w2.shape), _full_spec(b2.shape),
                _full_spec(wqkv.shape),
            ],
            out_specs=tuple(
                pl.BlockSpec((1, TP, D2), lambda b, t: (b, t, 0))
                for _ in range(3)),
        ),
        compiler_params=pltpu.CompilerParams(
            dimension_semantics=("parallel", "parallel"),
            vmem_limit_bytes=_vmem_limit(p1_need, vmem_cap)),
        cost_estimate=pl.CostEstimate(
            flops=2 * B * P * (D1 * HID + HID * D2 + D2 * 3 * D2),
            transcendentals=0,
            bytes_accessed=(4 * B * P * D1 + 3 * 2 * B * P * D2
                            + weight_bytes)),
    )(x_bpc, w1, b1, w2, b2, wqkv)

    # ---- pass 2: single-head scaled-dot-product attention over points -----
    p2_need = (2 * (2 * TQ * D2 + 2 * 2 * P * D2 + 4 * TQ * D2)  # dbl-buf IO
               + 3 * 4 * TQ * P)                         # f32 score strip
    att_feat = pl.pallas_call(
        _attention_kernel,
        out_shape=jax.ShapeDtypeStruct((B, P, D2), jnp.float32),
        grid_spec=pltpu.PrefetchScalarGridSpec(
            num_scalar_prefetch=0,
            grid=(B, P // TQ),
            in_specs=[
                pl.BlockSpec((1, TQ, D2), lambda b, qt: (b, qt, 0)),
                pl.BlockSpec((1, P, D2), lambda b, qt: (b, 0, 0)),
                pl.BlockSpec((1, P, D2), lambda b, qt: (b, 0, 0)),
            ],
            out_specs=pl.BlockSpec((1, TQ, D2), lambda b, qt: (b, qt, 0)),
        ),
        compiler_params=pltpu.CompilerParams(
            dimension_semantics=("parallel", "parallel"),
            vmem_limit_bytes=_vmem_limit(p2_need, vmem_cap)),
        cost_estimate=pl.CostEstimate(
            flops=4 * B * P * P * D2,
            transcendentals=B * P * P,
            bytes_accessed=3 * 2 * B * P * D2 + 4 * B * P * D2),
    )(q_all, k_all, v_all)

    # torch.tensor(range(x.shape[-1])).repeat(B, 1): at that point x is the
    # permuted [B, P, D2] backbone output, so shape[-1] == D2.
    # TODO(synk): if the real DGN backbone keeps P as the last dim at that
    #             point, this should be arange(P) instead of arange(D2).
    sample_idxs = jnp.tile(jnp.arange(D2, dtype=jnp.int32)[None, :], (B, 1))

    return xyz, att_feat, sample_idxs


def init_params(key):
    ks = jax.random.split(key, 7)

    def w(k, shape, fan_in):
        return jax.random.normal(k, shape, jnp.float32) / math.sqrt(fan_in)

    return {
        "w1": w(ks[0], (D1, HID), D1),
        "b1": jnp.zeros((1, HID), jnp.float32),
        "w2": w(ks[1], (HID, D2), HID),
        "b2": jnp.zeros((1, D2), jnp.float32),
        "wq": w(ks[2], (D2, D2), D2),
        "wk": w(ks[3], (D2, D2), D2),
        "wv": w(ks[4], (D2, D2), D2),
    }


if __name__ == "__main__":
    key = jax.random.PRNGKey(0)
    k_x, k_p = jax.random.split(key)

    B, P = 2, 128
    x = jax.random.normal(k_x, (B, D1, P), jnp.float32)   # [B, D1, P2]
    params = init_params(k_p)

    xyz, att_feat, sample_idxs = jax.jit(search_area_feat_extraction)(x, params)
    jax.block_until_ready((xyz, att_feat, sample_idxs))

    assert xyz.shape == (B, P, 3)
    assert att_feat.shape == (B, P, D2)
    assert sample_idxs.shape == (B, D2)
    assert bool(jnp.all(jnp.isfinite(att_feat)))
    print("KERNEL_OK")
</pallas_src>

<mosaic_0001>
module attributes {stable_mosaic.version = 11 : i64} {
  func.func @_attention_kernel(%arg0: i32, %arg1: i32, %arg2: memref<1x128x256xbf16, #tpu.memory_space<vmem>>, %arg3: memref<1x128x256xbf16, #tpu.memory_space<vmem>>, %arg4: memref<1x128x256xbf16, #tpu.memory_space<vmem>>, %arg5: memref<1x128x256xf32, #tpu.memory_space<vmem>>) attributes {dimension_semantics = [#tpu.dimension_semantics<parallel>, #tpu.dimension_semantics<parallel>], iteration_bounds = array<i64: 2, 1>, scalar_prefetch = 0 : i64, scratch_operands = 0 : i64, tpu.core_type = #tpu.core_type<tc>, window_params = [{transform_indices = @transform_0, window_bounds = array<i64: 1, 128, 256>}, {transform_indices = @transform_1, window_bounds = array<i64: 1, 128, 256>}, {transform_indices = @transform_2, window_bounds = array<i64: 1, 128, 256>}, {transform_indices = @transform_3, window_bounds = array<i64: 1, 128, 256>}]} {
    %c0 = arith.constant 0 : index
    %c0_0 = arith.constant 0 : index
    %c0_1 = arith.constant 0 : index
    %0 = vector.load %arg2[%c0, %c0_0, %c0_1] : memref<1x128x256xbf16, #tpu.memory_space<vmem>>, vector<1x128x256xbf16>
    %1 = vector.shape_cast %0 : vector<1x128x256xbf16> to vector<128x256xbf16>
    %c0_2 = arith.constant 0 : index
    %c0_3 = arith.constant 0 : index
    %c0_4 = arith.constant 0 : index
    %2 = vector.load %arg3[%c0_2, %c0_3, %c0_4] : memref<1x128x256xbf16, #tpu.memory_space<vmem>>, vector<1x128x256xbf16>
    %3 = vector.shape_cast %2 : vector<1x128x256xbf16> to vector<128x256xbf16>
    %c0_5 = arith.constant 0 : index
    %c0_6 = arith.constant 0 : index
    %c0_7 = arith.constant 0 : index
    %4 = vector.load %arg4[%c0_5, %c0_6, %c0_7] : memref<1x128x256xbf16, #tpu.memory_space<vmem>>, vector<1x128x256xbf16>
    %5 = vector.shape_cast %4 : vector<1x128x256xbf16> to vector<128x256xbf16>
    %cst = arith.constant dense<0.000000e+00> : vector<128x128xf32>
    %6 = tpu.matmul %1, %3, %cst {dimension_numbers = #tpu.dot_dimension_numbers<[1], [1], [0], [0], [0, 0, 1, 0], [], []>} : vector<128x256xbf16>, vector<128x256xbf16>, vector<128x128xf32> -> vector<128x128xf32>
    %cst_8 = arith.constant dense<0xFF800000> : vector<128xf32>
    %7 = vector.multi_reduction <maximumf>, %6, %cst_8 [1] : vector<128x128xf32> to vector<128xf32>
    %8 = vector.shape_cast %7 : vector<128xf32> to vector<128x1xf32>
    %9 = vector.broadcast %8 : vector<128x1xf32> to vector<128x128xf32>
    %10 = arith.subf %6, %9 : vector<128x128xf32>
    %11 = math.exp %10 : vector<128x128xf32>
    %cst_9 = arith.constant dense<0.000000e+00> : vector<128xf32>
    %12 = vector.multi_reduction <add>, %11, %cst_9 [1] : vector<128x128xf32> to vector<128xf32>
    %13 = vector.shape_cast %12 : vector<128xf32> to vector<128x1xf32>
    %14 = arith.truncf %11 : vector<128x128xf32> to vector<128x128xbf16>
    %cst_10 = arith.constant dense<0.000000e+00> : vector<128x256xf32>
    %15 = tpu.matmul %14, %5, %cst_10 {dimension_numbers = #tpu.dot_dimension_numbers<[1], [0], [0], [1], [0, 0, 1, 1], [], []>} : vector<128x128xbf16>, vector<128x256xbf16>, vector<128x256xf32> -> vector<128x256xf32>
    %16 = tpu.reciprocal %13 {approx = true} : vector<128x1xf32> -> vector<128x1xf32>
    %17 = vector.broadcast %16 : vector<128x1xf32> to vector<128x256xf32>
    %18 = arith.mulf %15, %17 : vector<128x256xf32>
    %c0_11 = arith.constant 0 : index
    %c0_12 = arith.constant 0 : index
    %c0_13 = arith.constant 0 : index
    %19 = vector.load %arg5[%c0_11, %c0_12, %c0_13] : memref<1x128x256xf32, #tpu.memory_space<vmem>>, vector<1x128x256xf32>
    %20 = vector.shape_cast %19 : vector<1x128x256xf32> to vector<128x256xf32>
    %21 = vector.shape_cast %18 : vector<128x256xf32> to vector<1x128x256xf32>
    tpu.vector_store %arg5[%c0_11, %c0_12, %c0_13], %21 {strides = array<i32>} : memref<1x128x256xf32, #tpu.memory_space<vmem>>, vector<1x128x256xf32>,
    return
  }
  func.func @transform_0(%arg0: i32, %arg1: i32) -> (i32, i32, i32) {
    %c0_i32 = arith.constant 0 : i32
    %c0_i32_0 = arith.constant 0 : i32
    return %arg0, %arg1, %c0_i32 : i32, i32, i32
  }
  func.func @transform_1(%arg0: i32, %arg1: i32) -> (i32, i32, i32) {
    %c0_i32 = arith.constant 0 : i32
    %c0_i32_0 = arith.constant 0 : i32
    %c0_i32_1 = arith.constant 0 : i32
    return %arg0, %c0_i32, %c0_i32_0 : i32, i32, i32
  }
  func.func @transform_2(%arg0: i32, %arg1: i32) -> (i32, i32, i32) {
    %c0_i32 = arith.constant 0 : i32
    %c0_i32_0 = arith.constant 0 : i32
    %c0_i32_1 = arith.constant 0 : i32
    return %arg0, %c0_i32, %c0_i32_0 : i32, i32, i32
  }
  func.func @transform_3(%arg0: i32, %arg1: i32) -> (i32, i32, i32) {
    %c0_i32 = arith.constant 0 : i32
    %c0_i32_0 = arith.constant 0 : i32
    return %arg0, %arg1, %c0_i32 : i32, i32, i32
  }
}

module attributes {stable_mosaic.version = 11 : i64} {
  func.func @_backbone_qkv_kernel(%arg0: i32, %arg1: i32, %arg2: memref<1x128x3xf32, #tpu.memory_space<vmem>>, %arg3: memref<3x64xf32, #tpu.memory_space<vmem>>, %arg4: memref<1x64xf32, #tpu.memory_space<vmem>>, %arg5: memref<64x256xbf16, #tpu.memory_space<vmem>>, %arg6: memref<1x256xf32, #tpu.memory_space<vmem>>, %arg7: memref<256x768xbf16, #tpu.memory_space<vmem>>, %arg8: memref<1x128x256xbf16, #tpu.memory_space<vmem>>, %arg9: memref<1x128x256xbf16, #tpu.memory_space<vmem>>, %arg10: memref<1x128x256xbf16, #tpu.memory_space<vmem>>) attributes {dimension_semantics = [#tpu.dimension_semantics<parallel>, #tpu.dimension_semantics<parallel>], iteration_bounds = array<i64: 2, 1>, scalar_prefetch = 0 : i64, scratch_operands = 0 : i64, tpu.core_type = #tpu.core_type<tc>, window_params = [{transform_indices = @transform_0, window_bounds = array<i64: 1, 128, 3>}, {pipeline_mode = #tpu.pipeline_mode<synchronous>, transform_indices = @transform_1, window_bounds = array<i64: 3, 64>}, {pipeline_mode = #tpu.pipeline_mode<synchronous>, transform_indices = @transform_2, window_bounds = array<i64: 1, 64>}, {pipeline_mode = #tpu.pipeline_mode<synchronous>, transform_indices = @transform_3, window_bounds = array<i64: 64, 256>}, {pipeline_mode = #tpu.pipeline_mode<synchronous>, transform_indices = @transform_4, window_bounds = array<i64: 1, 256>}, {pipeline_mode = #tpu.pipeline_mode<synchronous>, transform_indices = @transform_5, window_bounds = array<i64: 256, 768>}, {transform_indices = @transform_6, window_bounds = array<i64: 1, 128, 256>}, {transform_indices = @transform_7, window_bounds = array<i64: 1, 128, 256>}, {transform_indices = @transform_8, window_bounds = array<i64: 1, 128, 256>}]} {
    %c0 = arith.constant 0 : index
    %c0_0 = arith.constant 0 : index
    %c0_1 = arith.constant 0 : index
    %0 = vector.load %arg2[%c0, %c0_0, %c0_1] : memref<1x128x3xf32, #tpu.memory_space<vmem>>, vector<1x128x3xf32>
    %1 = vector.shape_cast %0 : vector<1x128x3xf32> to vector<128x3xf32>
    %2 = vector.extract_strided_slice %1 {offsets = [0, 0], sizes = [128, 1], strides = [1, 1]} : vector<128x3xf32> to vector<128x1xf32>
    %c0_2 = arith.constant 0 : index
    %c0_3 = arith.constant 0 : index
    %3 = vector.load %arg3[%c0_2, %c0_3] : memref<3x64xf32, #tpu.memory_space<vmem>>, vector<1x64xf32>
    %4 = vector.broadcast %2 : vector<128x1xf32> to vector<128x64xf32>
    %5 = vector.broadcast %3 : vector<1x64xf32> to vector<128x64xf32>
    %6 = arith.mulf %4, %5 : vector<128x64xf32>
    %7 = vector.extract_strided_slice %1 {offsets = [0, 1], sizes = [128, 1], strides = [1, 1]} : vector<128x3xf32> to vector<128x1xf32>
    %c1 = arith.constant 1 : index
    %c0_4 = arith.constant 0 : index
    %8 = vector.load %arg3[%c1, %c0_4] : memref<3x64xf32, #tpu.memory_space<vmem>>, vector<1x64xf32>
    %9 = vector.broadcast %7 : vector<128x1xf32> to vector<128x64xf32>
    %10 = vector.broadcast %8 : vector<1x64xf32> to vector<128x64xf32>
    %11 = arith.mulf %9, %10 : vector<128x64xf32>
    %12 = arith.addf %6, %11 : vector<128x64xf32>
    %13 = vector.extract_strided_slice %1 {offsets = [0, 2], sizes = [128, 1], strides = [1, 1]} : vector<128x3xf32> to vector<128x1xf32>
    %c2 = arith.constant 2 : index
    %c0_5 = arith.constant 0 : index
    %14 = vector.load %arg3[%c2, %c0_5] : memref<3x64xf32, #tpu.memory_space<vmem>>, vector<1x64xf32>
    %15 = vector.broadcast %13 : vector<128x1xf32> to vector<128x64xf32>
    %16 = vector.broadcast %14 : vector<1x64xf32> to vector<128x64xf32>
    %17 = arith.mulf %15, %16 : vector<128x64xf32>
    %18 = arith.addf %12, %17 : vector<128x64xf32>
    %c0_6 = arith.constant 0 : index
    %c0_7 = arith.constant 0 : index
    %19 = vector.load %arg4[%c0_6, %c0_7] : memref<1x64xf32, #tpu.memory_space<vmem>>, vector<1x64xf32>
    %20 = vector.broadcast %19 : vector<1x64xf32> to vector<128x64xf32>
    %21 = arith.addf %18, %20 : vector<128x64xf32>
    %cst = arith.constant 0.000000e+00 : f32
    %22 = vector.broadcast %cst : f32 to vector<128x64xf32>
    %23 = arith.maximumf %21, %22 : vector<128x64xf32>
    %24 = arith.truncf %23 : vector<128x64xf32> to vector<128x64xbf16>
    %c0_8 = arith.constant 0 : index
    %c0_9 = arith.constant 0 : index
    %25 = vector.load %arg5[%c0_8, %c0_9] : memref<64x256xbf16, #tpu.memory_space<vmem>>, vector<64x256xbf16>
    %cst_10 = arith.constant dense<0.000000e+00> : vector<128x256xf32>
    %26 = tpu.matmul %24, %25, %cst_10 {dimension_numbers = #tpu.dot_dimension_numbers<[1], [0], [0], [1], [0, 0, 1, 1], [], []>} : vector<128x64xbf16>, vector<64x256xbf16>, vector<128x256xf32> -> vector<128x256xf32>
    %c0_11 = arith.constant 0 : index
    %c0_12 = arith.constant 0 : index
    %27 = vector.load %arg6[%c0_11, %c0_12] : memref<1x256xf32, #tpu.memory_space<vmem>>, vector<1x256xf32>
    %28 = vector.broadcast %27 : vector<1x256xf32> to vector<128x256xf32>
    %29 = arith.addf %26, %28 : vector<128x256xf32>
    %cst_13 = arith.constant 0.000000e+00 : f32
    %30 = vector.broadcast %cst_13 : f32 to vector<128x256xf32>
    %31 = arith.maximumf %29, %30 : vector<128x256xf32>
    %32 = arith.truncf %31 : vector<128x256xf32> to vector<128x256xbf16>
    %c0_14 = arith.constant 0 : index
    %c0_15 = arith.constant 0 : index
    %33 = vector.load %arg7[%c0_14, %c0_15] : memref<256x768xbf16, #tpu.memory_space<vmem>>, vector<256x768xbf16>
    %cst_16 = arith.constant dense<0.000000e+00> : vector<128x768xf32>
    %34 = tpu.matmul %32, %33, %cst_16 {dimension_numbers = #tpu.dot_dimension_numbers<[1], [0], [0], [1], [0, 0, 1, 1], [], []>} : vector<128x256xbf16>, vector<256x768xbf16>, vector<128x768xf32> -> vector<128x768xf32>
    %35 = vector.extract_strided_slice %34 {offsets = [0, 0], sizes = [128, 256], strides = [1, 1]} : vector<128x768xf32> to vector<128x256xf32>
    %36 = arith.truncf %35 : vector<128x256xf32> to vector<128x256xbf16>
    %c0_17 = arith.constant 0 : index
    %c0_18 = arith.constant 0 : index
    %c0_19 = arith.constant 0 : index
    %37 = vector.load %arg8[%c0_17, %c0_18, %c0_19] : memref<1x128x256xbf16, #tpu.memory_space<vmem>>, vector<1x128x256xbf16>
    %38 = vector.shape_cast %37 : vector<1x128x256xbf16> to vector<128x256xbf16>
    %39 = vector.shape_cast %36 : vector<128x256xbf16> to vector<1x128x256xbf16>
    tpu.vector_store %arg8[%c0_17, %c0_18, %c0_19], %39 {strides = array<i32>} : memref<1x128x256xbf16, #tpu.memory_space<vmem>>, vector<1x128x256xbf16>,
    %40 = vector.extract_strided_slice %34 {offsets = [0, 256], sizes = [128, 256], strides = [1, 1]} : vector<128x768xf32> to vector<128x256xf32>
    %41 = arith.truncf %40 : vector<128x256xf32> to vector<128x256xbf16>
    %c0_20 = arith.constant 0 : index
    %c0_21 = arith.constant 0 : index
    %c0_22 = arith.constant 0 : index
    %42 = vector.load %arg9[%c0_20, %c0_21, %c0_22] : memref<1x128x256xbf16, #tpu.memory_space<vmem>>, vector<1x128x256xbf16>
    %43 = vector.shape_cast %42 : vector<1x128x256xbf16> to vector<128x256xbf16>
    %44 = vector.shape_cast %41 : vector<128x256xbf16> to vector<1x128x256xbf16>
    tpu.vector_store %arg9[%c0_20, %c0_21, %c0_22], %44 {strides = array<i32>} : memref<1x128x256xbf16, #tpu.memory_space<vmem>>, vector<1x128x256xbf16>,
    %45 = vector.extract_strided_slice %34 {offsets = [0, 512], sizes = [128, 256], strides = [1, 1]} : vector<128x768xf32> to vector<128x256xf32>
    %46 = arith.truncf %45 : vector<128x256xf32> to vector<128x256xbf16>
    %c0_23 = arith.constant 0 : index
    %c0_24 = arith.constant 0 : index
    %c0_25 = arith.constant 0 : index
    %47 = vector.load %arg10[%c0_23, %c0_24, %c0_25] : memref<1x128x256xbf16, #tpu.memory_space<vmem>>, vector<1x128x256xbf16>
    %48 = vector.shape_cast %47 : vector<1x128x256xbf16> to vector<128x256xbf16>
    %49 = vector.shape_cast %46 : vector<128x256xbf16> to vector<1x128x256xbf16>
    tpu.vector_store %arg10[%c0_23, %c0_24, %c0_25], %49 {strides = array<i32>} : memref<1x128x256xbf16, #tpu.memory_space<vmem>>, vector<1x128x256xbf16>,
    return
  }
  func.func @transform_0(%arg0: i32, %arg1: i32) -> (i32, i32, i32) {
    %c0_i32 = arith.constant 0 : i32
    %c0_i32_0 = arith.constant 0 : i32
    return %arg0, %arg1, %c0_i32 : i32, i32, i32
  }
  func.func @transform_1(%arg0: i32, %arg1: i32) -> (i32, i32) {
    %c0_i32 = arith.constant 0 : i32
    %c0_i32_0 = arith.constant 0 : i32
    %c0_i32_1 = arith.constant 0 : i32
    return %c0_i32, %c0_i32_0 : i32, i32
  }
  func.func @transform_2(%arg0: i32, %arg1: i32) -> (i32, i32) {
    %c0_i32 = arith.constant 0 : i32
    %c0_i32_0 = arith.constant 0 : i32
    %c0_i32_1 = arith.constant 0 : i32
    return %c0_i32, %c0_i32_0 : i32, i32
  }
  func.func @transform_3(%arg0: i32, %arg1: i32) -> (i32, i32) {
    %c0_i32 = arith.constant 0 : i32
    %c0_i32_0 = arith.constant 0 : i32
    %c0_i32_1 = arith.constant 0 : i32
    return %c0_i32, %c0_i32_0 : i32, i32
  }
  func.func @transform_4(%arg0: i32, %arg1: i32) -> (i32, i32) {
    %c0_i32 = arith.constant 0 : i32
    %c0_i32_0 = arith.constant 0 : i32
    %c0_i32_1 = arith.constant 0 : i32
    return %c0_i32, %c0_i32_0 : i32, i32
  }
  func.func @transform_5(%arg0: i32, %arg1: i32) -> (i32, i32) {
    %c0_i32 = arith.constant 0 : i32
    %c0_i32_0 = arith.constant 0 : i32
    %c0_i32_1 = arith.constant 0 : i32
    return %c0_i32, %c0_i32_0 : i32, i32
  }
  func.func @transform_6(%arg0: i32, %arg1: i32) -> (i32, i32, i32) {
    %c0_i32 = arith.constant 0 : i32
    %c0_i32_0 = arith.constant 0 : i32
    return %arg0, %arg1, %c0_i32 : i32, i32, i32
  }
  func.func @transform_7(%arg0: i32, %arg1: i32) -> (i32, i32, i32) {
    %c0_i32 = arith.constant 0 : i32
    %c0_i32_0 = arith.constant 0 : i32
    return %arg0, %arg1, %c0_i32 : i32, i32, i32
  }
  func.func @transform_8(%arg0: i32, %arg1: i32) -> (i32, i32, i32) {
    %c0_i32 = arith.constant 0 : i32
    %c0_i32_0 = arith.constant 0 : i32
    return %arg0, %arg1, %c0_i32 : i32, i32, i32
  }
}

</mosaic_0001>

<bundles_post_ra>
// kernel: search_area_feat_extraction.3
= control target key start
LH: loop header
LB: loop body
LE: loop exit
PB: predicated region body
PF: predicated region fallthrough
CT: control target
= control target key end

     0   :  { %8 = vsyncpa [#allocation3], 0  ;;  %s1720_s0 = inlined_call_operand.vmem [shape: bf16[2,128,256], index: 0, kind: input, shape index: {}]   ;;  %s1721_s1 = inlined_call_operand.vmem [shape: bf16[2,128,256], index: 1, kind: input, shape index: {}]   ;;  %s1722_s2 = inlined_call_operand.vmem [shape: bf16[2,128,256], index: 2, kind: input, shape index: {}]   ;;  %s1723_s3 = inlined_call_operand.hbm [shape: f32[2,128,256], index: 3, kind: output, shape index: {}]  }
   0x1   :  { %10 = vsyncpa [#allocation3 + $0x1], 0  ;;  %s1430_s12 = smov 0   ;;  %s1432_s13 = smov 0  }
   0x2   :  { %s1434_s14 = smov 0   ;;  %s1436_s15 = smov 0  }
   0x3   :  { %s1438_s16 = smov 0   ;;  %s1440_s17 = smov 0  }
   0x4 LB: > { %s1065_s18 = sadd.s32 4294967295, %s1404_s17   ;;  %s1066_s19 = sadd.s32 4294967294, %s1404_s17   ;;  %s1404_s17 = sphi %s1440_s17, %s16_s17   ;;  %s1400_s16 = sphi %s1438_s16, %s1730_s16   ;;  %s1396_s15 = sphi %s1436_s15, %s1729_s15   ;;  %s1392_s14 = sphi %s1434_s14, %s1728_s14   ;;  %s1388_s13 = sphi %s1432_s13, %s1727_s13   ;;  %s1384_s12 = sphi %s1430_s12, %s1726_s12  }
   0x5   : > { %s28_s20 = sadd.s32 1, %s1400_s16  ;;  %s117_s21 = sadd.s32 1, %s1392_s14 }
   0x6   : > { %p30_p0 = scmp.ge.s32.totalorder %s28_s20, 2  ;;  %p127_p1 = scmp.ne.s32.totalorder %s1392_s14, %s1388_s13 }
   0x7   : > { %p128_p2 = scmp.eq.s32.totalorder %s1065_s18, 1  ;;  %p133_p3 = scmp.ne.s32.totalorder %s1388_s13, %s1384_s12 }
   0x8   : > { %s1732_s20 = smov (%p30_p0, %s28_s20), 0  ;;  %p134_p5 = scmp.eq.s32.totalorder %s1066_s19, 1 }
   0x9   : > { %p1470_p4 = por %p128_p2, %p127_p1  ;;  %s112_s23 = ssub.s32 %s1400_s16, %s1732_s20 }
   0xa   : > { %p1069_p6 = scmp.ge.s32.totalorder %s1404_s17, 1  ;;  %p115_p7 = scmp.eq.s32.totalorder %s112_s23, 0 }
   0xb   : > { %p1477_p8 = por %p134_p5, %p133_p3  ;;  %p182_p9 = scmp.lt.s32.totalorder %s1404_s17, 3 }
   0xc   : > { %s1483_s25 = scalar_select %p115_p7, %s1392_s14, %s117_s21  }
   0xd   : > { %p183_p10 = pnand %p1069_p6, %p182_p9 }
   0xe   : > { %p222_p11 = scmp.lt.s32.totalorder (!%p183_p10), %s1396_s15, 1  ;;  %s218_s10 = sand.u32 (!%p183_p10), 1, %s1388_s13  }
   0xf   : > { %186 = sbr.rel (%p183_p10) target bundleno = 715 (0x2cb), region = 32  ;;  %s1070_s11 = sshll.u32 (!%p183_p10), %s218_s10, 8 }
  0x10   : > { %s1630_s18 = scalar_lea.vmem (!%p183_p10), [#allocation2], %s1070_s11  ;;  %s1133_s19 = sshll.u32 (!%p183_p10), %s1396_s15, 12 }
  0x11   : > { %s959_s21 = sshll.u32 (!%p183_p10), %s1630_s18, 4  ;;  %s1407_s29 = smov (!%p183_p10), [#allocation2]   ;;  %s1669_s21 = int_to_ptr.vmem [resolvable:$true] %s959_s21 }
  0x12   : > { %s1328_s28 = scalar_lea.vmem (!%p183_p10), %s1669_s21, 4096 }
  0x13   : > { %p1329_p12 = scmp.ne.s32.totalorder (!%p183_p10), %s1669_s21, %s1328_s28 }
  0x14   : > { %s223_s26 = scalar_select %p222_p11, %s1396_s15, 1 }
  0x15   : > { %s1675_s15 = scalar_lea.sflag [#allocation3], %s218_s10  ;;  %p1330_p13 = pnand %p1329_p12, %p1470_p4 }
  0x16   : > { %s1487_s27 = sshll.u32 %s223_s26, 7 }
  0x17   : > { %s1493_s30 = scalar_lea.vmem %s1721_s1, %s1487_s27  ;;  %s1504_s6 = scalar_lea.vmem %s1720_s0, %s1487_s27 }
  0x18   : > { %v1192_v0 = vld [vmem:[%s1493_s30 + $0x74] ss:$8 sps:$4 sm:$0xff]   ;;  %v1194_v1 = vld [vmem:[%s1493_s30 + $0x70] ss:$8 sps:$4 sm:$0xff]   ;;  %v1195_v2 = vld [vmem:[%s1493_s30 + $0x64] ss:$8 sps:$4 sm:$0xff]   ;;  %s1537_s9 = scalar_lea.vmem %s1722_s2, %s1487_s27  ;;  %s1667_s27 = scalar_lea.hbm %s1723_s3, %s1133_s19 }
  0x19   : > { %452 = vmatprep.subr.bf16.mxu0 %v1192_v0  ;;  %v1197_v3 = vld [vmem:[%s1493_s30 + $0x60] ss:$8 sps:$4 sm:$0xff]   ;;  %v1198_v4 = vld [vmem:[%s1493_s30 + $0x54] ss:$8 sps:$4 sm:$0xff]   ;;  %v1218_v5 = vld [vmem:[%s1504_s6 + $0x4] ss:$8 sps:$4 sm:$0xff]   ;;  %p1331_p0 = pneg %p1330_p13 }
  0x1a   : > { %453 = vmatpush1.bf16.xpose.msra.mxu0 %v1194_v1  ;;  %484 = vmatprep.mubr.bf16.mxu0 %v1218_v5  ;;  %v1200_v6 = vld [vmem:[%s1493_s30 + $0x50] ss:$8 sps:$4 sm:$0xff]   ;;  %v1201_v7 = vld [vmem:[%s1493_s30 + $0x44] ss:$8 sps:$4 sm:$0xff]   ;;  %v1203_v8 = vld [vmem:[%s1493_s30 + $0x40] ss:$8 sps:$4 sm:$0xff]  }
  0x1b   : > { %454 = vmatprep.subr.bf16.mxu0 %v1195_v2  ;;  %v1204_v9 = vld [vmem:[%s1493_s30 + $0x34] ss:$8 sps:$4 sm:$0xff]   ;;  %v1206_v10 = vld [vmem:[%s1493_s30 + $0x30] ss:$8 sps:$4 sm:$0xff]   ;;  %v1207_v11 = vld [vmem:[%s1493_s30 + $0x24] ss:$8 sps:$4 sm:$0xff]  }
  0x1c   : > { %v1209_v12 = vld [vmem:[%s1493_s30 + $0x20] ss:$8 sps:$4 sm:$0xff]   ;;  %v1210_v13 = vld [vmem:[%s1493_s30 + $0x14] ss:$8 sps:$4 sm:$0xff]   ;;  %v1212_v14 = vld [vmem:[%s1493_s30 + $0x10] ss:$8 sps:$4 sm:$0xff]  }
  0x1d   : > { %v1213_v15 = vld [vmem:[%s1493_s30 + $0x4] ss:$8 sps:$4 sm:$0xff]   ;;  %v1215_v16 = vld [vmem:[%s1493_s30] ss:$8 sps:$4 sm:$0xff]   ;;  %v1219_v18 = vld [vmem:[%s1504_s6 + $0x14] ss:$8 sps:$4 sm:$0xff]  }
  0x1e   : > { %v1216_v17 = vld [vmem:[%s1504_s6] ss:$8 sps:$4 sm:$0xff]   ;;  %v1221_v19 = vld [vmem:[%s1504_s6 + $0x10] ss:$8 sps:$4 sm:$0xff]   ;;  %v1222_v20 = vld [vmem:[%s1504_s6 + $0x24] ss:$8 sps:$4 sm:$0xff]  }
  0x1f   : > { %v1224_v21 = vld [vmem:[%s1504_s6 + $0x20] ss:$8 sps:$4 sm:$0xff]   ;;  %v1225_v22 = vld [vmem:[%s1504_s6 + $0x34] ss:$8 sps:$4 sm:$0xff]   ;;  %v1227_v23 = vld [vmem:[%s1504_s6 + $0x30] ss:$8 sps:$4 sm:$0xff]  }
  0x20   : > { %v1228_v24 = vld [vmem:[%s1504_s6 + $0x44] ss:$8 sps:$4 sm:$0xff]   ;;  %v1230_v25 = vld [vmem:[%s1504_s6 + $0x40] ss:$8 sps:$4 sm:$0xff]   ;;  %v1231_v26 = vld [vmem:[%s1504_s6 + $0x54] ss:$8 sps:$4 sm:$0xff]  }
  0x21   : > { %v1233_v27 = vld [vmem:[%s1504_s6 + $0x50] ss:$8 sps:$4 sm:$0xff]   ;;  %v1234_v28 = vld [vmem:[%s1504_s6 + $0x64] ss:$8 sps:$4 sm:$0xff]   ;;  %v1236_v29 = vld [vmem:[%s1504_s6 + $0x60] ss:$8 sps:$4 sm:$0xff]  }
  0x22   : > { %455 = vmatpush1.bf16.xpose.msra.mxu0 %v1197_v3  ;;  %v1237_v30 = vld [vmem:[%s1504_s6 + $0x74] ss:$8 sps:$4 sm:$0xff]   ;;  %v1239_v31 = vld [vmem:[%s1504_s6 + $0x70] ss:$8 sps:$4 sm:$0xff]   ;;  %v1243_v34 = vld [vmem:[%s1537_s9 + $0x64] ss:$8 sps:$4 sm:$0xff]  }
  0x23   : > { %456 = vmatprep.subr.bf16.mxu0 %v1198_v4  ;;  %v1240_v32 = vld [vmem:[%s1537_s9 + $0x74] ss:$8 sps:$4 sm:$0xff]   ;;  %v1242_v33 = vld [vmem:[%s1537_s9 + $0x70] ss:$8 sps:$4 sm:$0xff]   ;;  %v1245_v35 = vld [vmem:[%s1537_s9 + $0x60] ss:$8 sps:$4 sm:$0xff]  }
  0x24   : > { %749 = vmatprep.subr.bf16.mxu1 %v1240_v32  ;;  %v1246_v41 = vld [vmem:[%s1537_s9 + $0x54] ss:$8 sps:$4 sm:$0xff]   ;;  %v1248_v43 = vld [vmem:[%s1537_s9 + $0x50] ss:$8 sps:$4 sm:$0xff]   ;;  %v1249_v45 = vld [vmem:[%s1537_s9 + $0x44] ss:$8 sps:$4 sm:$0xff]  }
  0x25   : > { %750 = vmatpush1.bf16.msra.mxu1 %v1242_v33  ;;  %v1251_v47 = vld [vmem:[%s1537_s9 + $0x40] ss:$8 sps:$4 sm:$0xff]   ;;  %v1252_v49 = vld [vmem:[%s1537_s9 + $0x34] ss:$8 sps:$4 sm:$0xff]   ;;  %v1254_v51 = vld [vmem:[%s1537_s9 + $0x30] ss:$8 sps:$4 sm:$0xff]  }
  0x26   : > { %751 = vmatprep.subr.bf16.mxu1 %v1243_v34  ;;  %v1255_v53 = vld [vmem:[%s1537_s9 + $0x24] ss:$8 sps:$4 sm:$0xff]   ;;  %v1257_v55 = vld [vmem:[%s1537_s9 + $0x20] ss:$8 sps:$4 sm:$0xff]   ;;  %v1258_v57 = vld [vmem:[%s1537_s9 + $0x14] ss:$8 sps:$4 sm:$0xff]  }
  0x27   : > { %v1260_v59 = vld [vmem:[%s1537_s9 + $0x10] ss:$8 sps:$4 sm:$0xff]   ;;  %v1261_v61 = vld [vmem:[%s1537_s9 + $0x4] ss:$8 sps:$4 sm:$0xff]   ;;  %v1263_v63 = vld [vmem:[%s1537_s9] ss:$8 sps:$4 sm:$0xff]  }
  0x28   : > { %v1406_v2 = vmov 0   ;;  %s1332_s30 = sshll.u32 %s1407_s29, 4  ;;  %s1333_s30 = int_to_ptr.vmem [resolvable:$false] %s1332_s30 }
  0x29   : > { %752 = vmatpush1.bf16.msra.mxu1 %v1245_v35  ;;  %781 = vmatprep.mubr.bf16.mxu1 %v1406_v2  ;;  %s1334_s4 = scalar_lea.vmem %s1333_s30, 8192  ;;  %p1335_p1 = scmp.lt.s32.totalorder %s1669_s21, %s1333_s30 }
  0x2a   : > { %457 = vmatpush1.bf16.xpose.msra.mxu0 %v1200_v6  ;;  %753 = vmatprep.subr.bf16.mxu1 %v1246_v41  ;;  %p1336_p2 = scmp.lt.s32.totalorder %s1334_s4, %s1328_s28 }
  0x2b   : > { %458 = vmatprep.subr.bf16.mxu0 %v1201_v7 }
  0x2c   : > { %p1337_p3 = por %p1336_p2, %p1335_p1 }
  0x2d   : > { %754 = vmatpush1.bf16.msra.mxu1 %v1248_v43 }
  0x2e   : > { %755 = vmatprep.subr.bf16.mxu1 %v1249_v45  ;;  %p1338_p5 = pnand %p1337_p3, %p1331_p0 }
  0x31   : > { %756 = vmatpush1.bf16.msra.mxu1 %v1251_v47 }
  0x32   : > { %459 = vmatpush1.bf16.xpose.msra.mxu0 %v1203_v8  ;;  %757 = vmatprep.subr.bf16.mxu1 %v1252_v49 }
  0x33   : > { %460 = vmatprep.subr.bf16.mxu0 %v1204_v9 }
  0x35   : > { %758 = vmatpush1.bf16.msra.mxu1 %v1254_v51 }
  0x36   : > { %759 = vmatprep.subr.bf16.mxu1 %v1255_v53 }
  0x39   : > { %760 = vmatpush1.bf16.msra.mxu1 %v1257_v55 }
  0x3a   : > { %461 = vmatpush1.bf16.xpose.msra.mxu0 %v1206_v10  ;;  %761 = vmatprep.subr.bf16.mxu1 %v1258_v57 }
  0x3b   : > { %462 = vmatprep.subr.bf16.mxu0 %v1207_v11 }
  0x3d   : > { %762 = vmatpush1.bf16.msra.mxu1 %v1260_v59 }
  0x3e   : > { %763 = vmatprep.subr.bf16.mxu1 %v1261_v61 }
  0x41   : > { %764 = vmatpush1.bf16.msra.mxu1 %v1263_v63 }
  0x42   : > { %463 = vmatpush1.bf16.xpose.msra.mxu0 %v1209_v12 }
  0x43   : > { %464 = vmatprep.subr.bf16.mxu0 %v1210_v13 }
  0x4a   : > { %465 = vmatpush1.bf16.xpose.msra.mxu0 %v1212_v14 }
  0x4b   : > { %466 = vmatprep.subr.bf16.mxu0 %v1213_v15 }
  0x52   : > { %467 = vmatpush1.bf16.xpose.msra.mxu0 %v1215_v16 }
  0x59   : > { %485 = vmatmul.mubr.bf16.vlgmr.msra.gmra.mxu0 %v1216_v17 }
  0x5a   : > { %492 = vmatprep.mubr.bf16.mxu0 %v1219_v18 }
  0x61   : > { %493 = vmatmul.mubr.bf16.gmra.mxu0 %v1221_v19 }
  0x62   : > { %500 = vmatprep.mubr.bf16.mxu0 %v1222_v20 }
  0x69   : > { %501 = vmatmul.mubr.bf16.gmra.mxu0 %v1224_v21 }
  0x6a   : > { %508 = vmatprep.mubr.bf16.mxu0 %v1225_v22 }
  0x71   : > { %509 = vmatmul.mubr.bf16.gmra.mxu0 %v1227_v23 }
  0x72   : > { %516 = vmatprep.mubr.bf16.mxu0 %v1228_v24 }
  0x79   : > { %517 = vmatmul.mubr.bf16.gmra.mxu0 %v1230_v25 }
  0x7a   : > { %524 = vmatprep.mubr.bf16.mxu0 %v1231_v26 }
  0x81   : > { %525 = vmatmul.mubr.bf16.gmra.mxu0 %v1233_v27 }
  0x82   : > { %532 = vmatprep.mubr.bf16.mxu0 %v1234_v28 }
  0x89   : > { %533 = vmatmul.mubr.bf16.gmra.mxu0 %v1236_v29 }
  0x8a   : > { %540 = vmatprep.mubr.bf16.mxu0 %v1237_v30 }
  0x91   : > { %541 = vmatmul.mubr.bf16.gmra.mxu0 %v1239_v31 }
 0x119   : > { %v1543_v36 = vpop.f32.mrf.mxu0 }
 0x11a   : > { %549 = vmax.xlane.f32.xlu0 %v1543_v36 }
 0x11b   : > { %v488_v37 = vpop.f32.mrf.mxu0 }
 0x11d   : > { %v1546_v38 = vpop.f32.mrf.mxu0 }
 0x11e   : > { %551 = vmax.xlane.f32.xlu0 %v1546_v38 }
 0x11f   : > { %v491_v39 = vpop.f32.mrf.mxu0 }
 0x121   : > { %v1549_v40 = vpop.f32.mrf.mxu0 }
 0x122   : > { %553 = vmax.xlane.f32.xlu1 %v1549_v40 }
 0x123   : > { %v496_v42 = vpop.f32.mrf.mxu0 }
 0x125   : > { %v1554_v44 = vpop.f32.mrf.mxu0 }
 0x126   : > { %555 = vmax.xlane.f32.xlu1 %v1554_v44 }
 0x127   : > { %v499_v46 = vpop.f32.mrf.mxu0 }
 0x129   : > { %v1559_v48 = vpop.f32.mrf.mxu0 }
 0x12a   : > { %557 = vmax.xlane.f32.xlu0 %v1559_v48 }
 0x12b   : > { %v504_v50 = vpop.f32.mrf.mxu0 }
 0x12d   : > { %v1564_v52 = vpop.f32.mrf.mxu0 }
 0x12e   : > { %559 = vmax.xlane.f32.xlu1 %v1564_v52 }
 0x12f   : > { %v507_v54 = vpop.f32.mrf.mxu0 }
 0x131   : > { %v1569_v56 = vpop.f32.mrf.mxu0 }
 0x132   : > { %561 = vmax.xlane.f32.xlu0 %v1569_v56 }
 0x133   : > { %v512_v58 = vpop.f32.mrf.mxu0 }
 0x135   : > { %v1574_v60 = vpop.f32.mrf.mxu0 }
 0x136   : > { %563 = vmax.xlane.f32.xlu1 %v1574_v60 }
 0x137   : > { %v515_v62 = vpop.f32.mrf.mxu0 }
 0x139   : > { %v1579_v0 = vpop.f32.mrf.mxu0 }
 0x13a   : > { %565 = vmax.xlane.f32.xlu0 %v1579_v0 }
 0x13b   : > { %v520_v1 = vpop.f32.mrf.mxu0 }
 0x13d   : > { %v1583_v3 = vpop.f32.mrf.mxu0 }
 0x13e   : > { %567 = vmax.xlane.f32.xlu1 %v1583_v3 }
 0x13f   : > { %v523_v4 = vpop.f32.mrf.mxu0 }
 0x141   : > { %v1586_v5 = vpop.f32.mrf.mxu0 }
 0x142   : > { %569 = vmax.xlane.f32.xlu0 %v1586_v5 }
 0x143   : > { %v528_v6 = vpop.f32.mrf.mxu0 }
 0x145   : > { %v1589_v7 = vpop.f32.mrf.mxu0 }
 0x146   : > { %571 = vmax.xlane.f32.xlu1 %v1589_v7 }
 0x147   : > { %v531_v8 = vpop.f32.mrf.mxu0 }
 0x149   : > { %v1592_v9 = vpop.f32.mrf.mxu0 }
 0x14a   : > { %573 = vmax.xlane.f32.xlu0 %v1592_v9 }
 0x14b   : > { %v536_v10 = vpop.f32.mrf.mxu0 }
 0x14d   : > { %v1595_v11 = vpop.f32.mrf.mxu0 }
 0x14e   : > { %575 = vmax.xlane.f32.xlu1 %v1595_v11 }
 0x14f   : > { %v539_v12 = vpop.f32.mrf.mxu0 }
 0x151   : > { %v1598_v13 = vpop.f32.mrf.mxu0 }
 0x152   : > { %577 = vmax.xlane.f32.xlu0 %v1598_v13 }
 0x153   : > { %v544_v14 = vpop.f32.mrf.mxu0 }
 0x155   : > { %v1601_v15 = vpop.f32.mrf.mxu0 }
 0x156   : > { %579 = vmax.xlane.f32.xlu1 %v1601_v15 }
 0x157   : > { %v547_v16 = vpop.f32.mrf.mxu0 }
 0x1a3   : > { %v550_v17 = vpop.xlane.xlu0 %549 }
 0x1a4   : > { %v581_v18 = vsub.f32 %v1543_v36, %v550_v17 }
 0x1a6   : > { %v597_v19 = vmul.f32 1.442695, %v581_v18 }
 0x1a7   : > { %v552_v20 = vpop.xlane.xlu0 %551 }
 0x1a8   : > { %1264 = vpow2.f32 %v597_v19  ;;  %v582_v21 = vsub.f32 %v1546_v38, %v552_v20 }
 0x1aa   : > { %v599_v22 = vmul.f32 1.442695, %v582_v21 }
 0x1ab   : > { %v554_v23 = vpop.xlane.xlu1 %553 }
 0x1ac   : > { %1266 = vpow2.f32 %v599_v22  ;;  %v583_v24 = vsub.f32 %v1549_v40, %v554_v23 }
 0x1ae   : > { %v601_v25 = vmul.f32 1.442695, %v583_v24 }
 0x1af   : > { %v556_v26 = vpop.xlane.xlu1 %555 }
 0x1b0   : > { %1268 = vpow2.f32 %v601_v25  ;;  %v584_v27 = vsub.f32 %v1554_v44, %v556_v26 }
 0x1b2   : > { %v603_v28 = vmul.f32 1.442695, %v584_v27 }
 0x1b3   : > { %v558_v29 = vpop.xlane.xlu0 %557 }
 0x1b4   : > { %1270 = vpow2.f32 %v603_v28  ;;  %v585_v30 = vsub.f32 %v1559_v48, %v558_v29 }
 0x1b5   : > { %v1265_v31 = vpop.eup %1264 }
 0x1b6   : > { %v605_v32 = vmul.f32 1.442695, %v585_v30  ;;  %629 = vadd.xlane.f32.xlu0 %v1265_v31 }
 0x1b7   : > { %v560_v33 = vpop.xlane.xlu1 %559 }
 0x1b8   : > { %1272 = vpow2.f32 %v605_v32  ;;  %v586_v34 = vsub.f32 %v1564_v52, %v560_v33 }
 0x1b9   : > { %v1267_v35 = vpop.eup %1266 }
 0x1ba   : > { %v607_v36 = vmul.f32 1.442695, %v586_v34  ;;  %631 = vadd.xlane.f32.xlu1 %v1267_v35  ;;  %v661_v37 = vpack.c.bf16 %v1267_v35, %v1265_v31 }
 0x1bb   : > { %v562_v38 = vpop.xlane.xlu0 %561 }
 0x1bc   : > { %1274 = vpow2.f32 %v607_v36  ;;  %v587_v39 = vsub.f32 %v1569_v56, %v562_v38  ;;  %782 = vmatmul.mubr.bf16.vlgmr.msra.gmra.mxu1 %v661_v37 }
 0x1bd   : > { %v1269_v40 = vpop.eup %1268  ;;  %791 = vmatprep.mubr.bf16.mxu1 %v1406_v2 }
 0x1be   : > { %v609_v41 = vmul.f32 1.442695, %v587_v39  ;;  %633 = vadd.xlane.f32.xlu0 %v1269_v40 }
 0x1bf   : > { %v564_v42 = vpop.xlane.xlu1 %563 }
 0x1c0   : > { %1276 = vpow2.f32 %v609_v41  ;;  %v588_v43 = vsub.f32 %v1574_v60, %v564_v42 }
 0x1c1   : > { %v1271_v44 = vpop.eup %1270 }
 0x1c2   : > { %v611_v45 = vmul.f32 1.442695, %v588_v43  ;;  %635 = vadd.xlane.f32.xlu1 %v1271_v44  ;;  %v662_v46 = vpack.c.bf16 %v1271_v44, %v1269_v40 }
 0x1c3   : > { %v566_v47 = vpop.xlane.xlu0 %565 }
 0x1c4   : > { %1278 = vpow2.f32 %v611_v45  ;;  %v589_v48 = vsub.f32 %v1579_v0, %v566_v47  ;;  %792 = vmatmul.mubr.bf16.gmra.mxu1 %v662_v46 }
 0x1c5   : > { %v1273_v49 = vpop.eup %1272  ;;  %801 = vmatprep.mubr.bf16.mxu1 %v1406_v2 }
 0x1c6   : > { %v613_v50 = vmul.f32 1.442695, %v589_v48  ;;  %637 = vadd.xlane.f32.xlu0 %v1273_v49 }
 0x1c7   : > { %v568_v51 = vpop.xlane.xlu1 %567 }
 0x1c8   : > { %1280 = vpow2.f32 %v613_v50  ;;  %v590_v52 = vsub.f32 %v1583_v3, %v568_v51 }
 0x1c9   : > { %v1275_v53 = vpop.eup %1274 }
 0x1ca   : > { %v615_v54 = vmul.f32 1.442695, %v590_v52  ;;  %639 = vadd.xlane.f32.xlu1 %v1275_v53  ;;  %v663_v55 = vpack.c.bf16 %v1275_v53, %v1273_v49 }
 0x1cb   : > { %v570_v56 = vpop.xlane.xlu0 %569 }
 0x1cc   : > { %1282 = vpow2.f32 %v615_v54  ;;  %v591_v57 = vsub.f32 %v1586_v5, %v570_v56  ;;  %802 = vmatmul.mubr.bf16.gmra.mxu1 %v663_v55 }
 0x1cd   : > { %v1277_v58 = vpop.eup %1276  ;;  %811 = vmatprep.mubr.bf16.mxu1 %v1406_v2 }
 0x1ce   : > { %v617_v59 = vmul.f32 1.442695, %v591_v57  ;;  %641 = vadd.xlane.f32.xlu0 %v1277_v58 }
 0x1cf   : > { %v572_v60 = vpop.xlane.xlu1 %571 }
 0x1d0   : > { %1284 = vpow2.f32 %v617_v59  ;;  %v592_v61 = vsub.f32 %v1589_v7, %v572_v60 }
 0x1d1   : > { %v1279_v62 = vpop.eup %1278 }
 0x1d2   : > { %v619_v63 = vmul.f32 1.442695, %v592_v61  ;;  %643 = vadd.xlane.f32.xlu1 %v1279_v62  ;;  %v664_v0 = vpack.c.bf16 %v1279_v62, %v1277_v58 }
 0x1d3   : > { %v574_v1 = vpop.xlane.xlu0 %573 }
 0x1d4   : > { %1286 = vpow2.f32 %v619_v63  ;;  %v593_v3 = vsub.f32 %v1592_v9, %v574_v1  ;;  %812 = vmatmul.mubr.bf16.gmra.mxu1 %v664_v0 }
 0x1d5   : > { %v1281_v4 = vpop.eup %1280  ;;  %821 = vmatprep.mubr.bf16.mxu1 %v1406_v2 }
 0x1d6   : > { %v621_v5 = vmul.f32 1.442695, %v593_v3  ;;  %645 = vadd.xlane.f32.xlu0 %v1281_v4 }
 0x1d7   : > { %v576_v6 = vpop.xlane.xlu1 %575 }
 0x1d8   : > { %1288 = vpow2.f32 %v621_v5  ;;  %v594_v8 = vsub.f32 %v1595_v11, %v576_v6 }
 0x1d9   : > { %v1283_v10 = vpop.eup %1282 }
 0x1da   : > { %v623_v7 = vmul.f32 1.442695, %v594_v8  ;;  %647 = vadd.xlane.f32.xlu1 %v1283_v10  ;;  %v665_v12 = vpack.c.bf16 %v1283_v10, %v1281_v4 }
 0x1db   : > { %v578_v14 = vpop.xlane.xlu0 %577 }
 0x1dc   : > { %1290 = vpow2.f32 %v623_v7  ;;  %v595_v16 = vsub.f32 %v1598_v13, %v578_v14  ;;  %822 = vmatmul.mubr.bf16.gmra.mxu1 %v665_v12 }
 0x1dd   : > { %v1285_v9 = vpop.eup %1284  ;;  %831 = vmatprep.mubr.bf16.mxu1 %v1406_v2 }
 0x1de   : > { %v625_v17 = vmul.f32 1.442695, %v595_v16  ;;  %649 = vadd.xlane.f32.xlu0 %v1285_v9 }
 0x1df   : > { %v580_v18 = vpop.xlane.xlu1 %579 }
 0x1e0   : > { %1292 = vpow2.f32 %v625_v17  ;;  %v596_v19 = vsub.f32 %v1601_v15, %v580_v18 }
 0x1e1   : > { %v1287_v20 = vpop.eup %1286 }
 0x1e2   : > { %v627_v11 = vmul.f32 1.442695, %v596_v19  ;;  %651 = vadd.xlane.f32.xlu1 %v1287_v20  ;;  %v666_v21 = vpack.c.bf16 %v1287_v20, %v1285_v9 }
 0x1e4   : > { %1294 = vpow2.f32 %v627_v11  ;;  %832 = vmatmul.mubr.bf16.gmra.mxu1 %v666_v21 }
 0x1e5   : > { %v1289_v22 = vpop.eup %1288  ;;  %841 = vmatprep.mubr.bf16.mxu1 %v1406_v2 }
 0x1e6   : > { %653 = vadd.xlane.f32.xlu0 %v1289_v22 }
 0x1e9   : > { %v1291_v13 = vpop.eup %1290 }
 0x1ea   : > { %655 = vadd.xlane.f32.xlu1 %v1291_v13  ;;  %v667_v23 = vpack.c.bf16 %v1291_v13, %v1289_v22 }
 0x1ec   : > { %842 = vmatmul.mubr.bf16.gmra.mxu1 %v667_v23 }
 0x1ed   : > { %v1293_v24 = vpop.eup %1292  ;;  %851 = vmatprep.mubr.bf16.mxu1 %v1406_v2 }
 0x1ee   : > { %657 = vadd.xlane.f32.xlu0 %v1293_v24 }
 0x1f1   : > { %v1295_v15 = vpop.eup %1294 }
 0x1f2   : > { %659 = vadd.xlane.f32.xlu1 %v1295_v15  ;;  %v668_v25 = vpack.c.bf16 %v1295_v15, %v1293_v24 }
 0x1f4   : > { %852 = vmatmul.mubr.bf16.gmra.mxu1 %v668_v25 }
 0x23f   : > { %v630_v26 = vpop.xlane.xlu0 %629 }
 0x240   : > { %1296 = vrcp.f32 %v630_v26 }
 0x243   : > { %v632_v27 = vpop.xlane.xlu1 %631 }
 0x244   : > { %1298 = vrcp.f32 %v632_v27 }
 0x247   : > { %v634_v28 = vpop.xlane.xlu0 %633 }
 0x248   : > { %1300 = vrcp.f32 %v634_v28 }
 0x24b   : > { %v636_v29 = vpop.xlane.xlu1 %635 }
 0x24c   : > { %1302 = vrcp.f32 %v636_v29 }
 0x24d   : > { %v1297_v30 = vpop.eup %1296 }
 0x24f   : > { %v638_v31 = vpop.xlane.xlu0 %637 }
 0x250   : > { %1304 = vrcp.f32 %v638_v31 }
 0x251   : > { %v1299_v35 = vpop.eup %1298 }
 0x253   : > { %v640_v36 = vpop.xlane.xlu1 %639 }
 0x254   : > { %1306 = vrcp.f32 %v640_v36 }
 0x255   : > { %v1301_v41 = vpop.eup %1300 }
 0x257   : > { %v642_v42 = vpop.xlane.xlu0 %641 }
 0x258   : > { %1308 = vrcp.f32 %v642_v42 }
 0x259   : > { %v1303_v47 = vpop.eup %1302 }
 0x25b   : > { %v644_v48 = vpop.xlane.xlu1 %643 }
 0x25c   : > { %1310 = vrcp.f32 %v644_v48 }
 0x25d   : > { %v1305_v53 = vpop.eup %1304 }
 0x25f   : > { %v646_v54 = vpop.xlane.xlu0 %645 }
 0x260   : > { %1312 = vrcp.f32 %v646_v54 }
 0x261   : > { %v1307_v59 = vpop.eup %1306 }
 0x263   : > { %v648_v60 = vpop.xlane.xlu1 %647 }
 0x264   : > { %1314 = vrcp.f32 %v648_v60 }
 0x265   : > { %v1309_v1 = vpop.eup %1308 }
 0x267   : > { %v650_v3 = vpop.xlane.xlu0 %649 }
 0x268   : > { %1316 = vrcp.f32 %v650_v3 }
 0x269   : > { %v1311_v10 = vpop.eup %1310 }
 0x26b   : > { %v652_v7 = vpop.xlane.xlu1 %651 }
 0x26c   : > { %1318 = vrcp.f32 %v652_v7 }
 0x26d   : > { %v1313_v17 = vpop.eup %1312 }
 0x26f   : > { %v654_v18 = vpop.xlane.xlu0 %653 }
 0x270   : > { %1320 = vrcp.f32 %v654_v18 }
 0x271   : > { %v1315_v22 = vpop.eup %1314 }
 0x273   : > { %v656_v13 = vpop.xlane.xlu1 %655 }
 0x274   : > { %1322 = vrcp.f32 %v656_v13 }
 0x275   : > { %v1317_v26 = vpop.eup %1316 }
 0x277   : > { %v658_v27 = vpop.xlane.xlu0 %657 }
 0x278   : > { %1324 = vrcp.f32 %v658_v27 }
 0x27c   : > { %v783_v32 = vpop.f32.mrf.mxu1 }
 0x27d   : > { %v878_v2 = vmul.f32 %v1297_v30, %v783_v32  ;;  %v1319_v32 = vpop.eup %1318 }
 0x27e   : > { %v785_v33 = vpop.f32.mrf.mxu1 }
 0x27f   : > { %910 = vst [vmem:[%s1630_s18] sm:$0xff] %v878_v2  ;;  %v879_v34 = vmul.f32 %v1297_v30, %v785_v33  ;;  %v660_v2 = vpop.xlane.xlu1 %659 }
 0x280   : > { %v787_v37 = vpop.f32.mrf.mxu1  ;;  %1326 = vrcp.f32 %v660_v2 }
 0x281   : > { %911 = vst [vmem:[%s1630_s18 + $0x8] sm:$0xff] %v879_v34  ;;  %v880_v38 = vmul.f32 %v1299_v35, %v787_v37  ;;  %v1321_v37 = vpop.eup %1320 }
 0x282   : > { %v789_v39 = vpop.f32.mrf.mxu1  ;;  %v1323_v42 = vpop.eup %1322 }
 0x283   : > { %912 = vst [vmem:[%s1630_s18 + $0x10] sm:$0xff] %v880_v38  ;;  %v881_v40 = vmul.f32 %v1299_v35, %v789_v39 }
 0x284   : > { %v793_v43 = vpop.f32.mrf.mxu1 }
 0x285   : > { %913 = vst [vmem:[%s1630_s18 + $0x18] sm:$0xff] %v881_v40  ;;  %v882_v44 = vmul.f32 %v1301_v41, %v793_v43 }
 0x286   : > { %v795_v45 = vpop.f32.mrf.mxu1 }
 0x287   : > { %914 = vst [vmem:[%s1630_s18 + $0x20] sm:$0xff] %v882_v44  ;;  %v883_v46 = vmul.f32 %v1301_v41, %v795_v45 }
 0x288   : > { %v797_v49 = vpop.f32.mrf.mxu1 }
 0x289   : > { %915 = vst [vmem:[%s1630_s18 + $0x28] sm:$0xff] %v883_v46  ;;  %v884_v50 = vmul.f32 %v1303_v47, %v797_v49 }
 0x28a   : > { %v799_v51 = vpop.f32.mrf.mxu1 }
 0x28b   : > { %916 = vst [vmem:[%s1630_s18 + $0x30] sm:$0xff] %v884_v50  ;;  %v885_v52 = vmul.f32 %v1303_v47, %v799_v51  ;;  %v1325_v47 = vpop.eup %1324 }
 0x28c   : > { %v803_v55 = vpop.f32.mrf.mxu1 }
 0x28d   : > { %917 = vst [vmem:[%s1630_s18 + $0x38] sm:$0xff] %v885_v52  ;;  %v886_v56 = vmul.f32 %v1305_v53, %v803_v55  ;;  %v1327_v52 = vpop.eup %1326 }
 0x28e   : > { %v805_v57 = vpop.f32.mrf.mxu1 }
 0x28f   : > { %918 = vst [vmem:[%s1630_s18 + $0x40] sm:$0xff] %v886_v56  ;;  %v887_v58 = vmul.f32 %v1305_v53, %v805_v57 }
 0x290   : > { %v807_v61 = vpop.f32.mrf.mxu1 }
 0x291   : > { %919 = vst [vmem:[%s1630_s18 + $0x48] sm:$0xff] %v887_v58  ;;  %v888_v62 = vmul.f32 %v1307_v59, %v807_v61 }
 0x292   : > { %v809_v63 = vpop.f32.mrf.mxu1 }
 0x293   : > { %920 = vst [vmem:[%s1630_s18 + $0x50] sm:$0xff] %v888_v62  ;;  %v889_v0 = vmul.f32 %v1307_v59, %v809_v63 }
 0x294   : > { %v813_v4 = vpop.f32.mrf.mxu1 }
 0x295   : > { %921 = vst [vmem:[%s1630_s18 + $0x58] sm:$0xff] %v889_v0  ;;  %v890_v5 = vmul.f32 %v1309_v1, %v813_v4 }
 0x296   : > { %v815_v6 = vpop.f32.mrf.mxu1 }
 0x297   : > { %922 = vst [vmem:[%s1630_s18 + $0x60] sm:$0xff] %v890_v5  ;;  %v891_v8 = vmul.f32 %v1309_v1, %v815_v6 }
 0x298   : > { %v817_v12 = vpop.f32.mrf.mxu1 }
 0x299   : > { %923 = vst [vmem:[%s1630_s18 + $0x68] sm:$0xff] %v891_v8  ;;  %v892_v14 = vmul.f32 %v1311_v10, %v817_v12 }
 0x29a   : > { %v819_v16 = vpop.f32.mrf.mxu1 }
 0x29b   : > { %924 = vst [vmem:[%s1630_s18 + $0x70] sm:$0xff] %v892_v14  ;;  %v893_v9 = vmul.f32 %v1311_v10, %v819_v16 }
 0x29c   : > { %v823_v19 = vpop.f32.mrf.mxu1 }
 0x29d   : > { %925 = vst [vmem:[%s1630_s18 + $0x78] sm:$0xff] %v893_v9  ;;  %v894_v20 = vmul.f32 %v1313_v17, %v823_v19 }
 0x29e   : > { %v825_v11 = vpop.f32.mrf.mxu1 }
 0x29f   : > { %926 = vst [vmem:[%s1630_s18 + $0x80] sm:$0xff] %v894_v20  ;;  %v895_v21 = vmul.f32 %v1313_v17, %v825_v11 }
 0x2a0   : > { %v827_v23 = vpop.f32.mrf.mxu1 }
 0x2a1   : > { %927 = vst [vmem:[%s1630_s18 + $0x88] sm:$0xff] %v895_v21  ;;  %v896_v24 = vmul.f32 %v1315_v22, %v827_v23 }
 0x2a2   : > { %v829_v15 = vpop.f32.mrf.mxu1 }
 0x2a3   : > { %928 = vst [vmem:[%s1630_s18 + $0x90] sm:$0xff] %v896_v24  ;;  %v897_v25 = vmul.f32 %v1315_v22, %v829_v15 }
 0x2a4   : > { %v833_v28 = vpop.f32.mrf.mxu1 }
 0x2a5   : > { %929 = vst [vmem:[%s1630_s18 + $0x98] sm:$0xff] %v897_v25  ;;  %v898_v29 = vmul.f32 %v1317_v26, %v833_v28 }
 0x2a6   : > { %v835_v30 = vpop.f32.mrf.mxu1 }
 0x2a7   : > { %930 = vst [vmem:[%s1630_s18 + $0xa0] sm:$0xff] %v898_v29  ;;  %v899_v31 = vmul.f32 %v1317_v26, %v835_v30 }
 0x2a8   : > { %v837_v33 = vpop.f32.mrf.mxu1 }
 0x2a9   : > { %931 = vst [vmem:[%s1630_s18 + $0xa8] sm:$0xff] %v899_v31  ;;  %v900_v34 = vmul.f32 %v1319_v32, %v837_v33 }
 0x2aa   : > { %v839_v35 = vpop.f32.mrf.mxu1 }
 0x2ab   : > { %932 = vst [vmem:[%s1630_s18 + $0xb0] sm:$0xff] %v900_v34  ;;  %v901_v36 = vmul.f32 %v1319_v32, %v839_v35 }
 0x2ac   : > { %v843_v38 = vpop.f32.mrf.mxu1 }
 0x2ad   : > { %933 = vst [vmem:[%s1630_s18 + $0xb8] sm:$0xff] %v901_v36  ;;  %v902_v39 = vmul.f32 %v1321_v37, %v843_v38 }
 0x2ae   : > { %v845_v40 = vpop.f32.mrf.mxu1 }
 0x2af   : > { %934 = vst [vmem:[%s1630_s18 + $0xc0] sm:$0xff] %v902_v39  ;;  %v903_v41 = vmul.f32 %v1321_v37, %v845_v40 }
 0x2b0   : > { %v847_v43 = vpop.f32.mrf.mxu1 }
 0x2b1   : > { %935 = vst [vmem:[%s1630_s18 + $0xc8] sm:$0xff] %v903_v41  ;;  %v904_v44 = vmul.f32 %v1323_v42, %v847_v43 }
 0x2b2   : > { %v849_v45 = vpop.f32.mrf.mxu1 }
 0x2b3   : > { %936 = vst [vmem:[%s1630_s18 + $0xd0] sm:$0xff] %v904_v44  ;;  %v905_v46 = vmul.f32 %v1323_v42, %v849_v45 }
 0x2b4   : > { %v853_v48 = vpop.f32.mrf.mxu1 }
 0x2b5   : > { %937 = vst [vmem:[%s1630_s18 + $0xd8] sm:$0xff] %v905_v46  ;;  %v906_v49 = vmul.f32 %v1325_v47, %v853_v48 }
 0x2b6   : > { %v855_v50 = vpop.f32.mrf.mxu1 }
 0x2b7   : > { %938 = vst [vmem:[%s1630_s18 + $0xe0] sm:$0xff] %v906_v49  ;;  %v907_v51 = vmul.f32 %v1325_v47, %v855_v50 }
 0x2b8   : > { %v857_v53 = vpop.f32.mrf.mxu1 }
 0x2b9   : > { %939 = vst [vmem:[%s1630_s18 + $0xe8] sm:$0xff] %v907_v51  ;;  %v908_v54 = vmul.f32 %v1327_v52, %v857_v53 }
 0x2ba   : > { %v859_v55 = vpop.f32.mrf.mxu1 }
 0x2bb   : > { %940 = vst [vmem:[%s1630_s18 + $0xf0] sm:$0xff] %v908_v54  ;;  %v909_v56 = vmul.f32 %v1327_v52, %v859_v55 }
 0x2bd   : > { %941 = vst [vmem:[%s1630_s18 + $0xf8] sm:$0xff] %v909_v56 }
 0x2be   : > { %1341 = shalt.err (!%p1338_p5)
}
 0x2bf   : > { %s1342_s5 = scalar_lea.hbm %s1667_s27, 4096  ;;  %s1346_s8 = scalar_lea.hbm %s1723_s3, 8192 }
 0x2c0   : > { %p1343_p6 = scmp.ne.s32.totalorder %s1667_s27, %s1342_s5  ;;  %p1347_p10 = scmp.lt.s32.totalorder %s1667_s27, %s1723_s3 }
 0x2c1   : > { %p1348_p11 = scmp.lt.s32.totalorder %s1346_s8, %s1342_s5 }
 0x2c2   : > { %p1344_p7 = pnand %p1343_p6, %p1470_p4 }
 0x2c3   : > { %p1349_p12 = por %p1348_p11, %p1347_p10 }
 0x2c4   : > { %p1345_p9 = pneg %p1344_p7 }
 0x2c6   : > { %p1350_p13 = pnand %p1349_p12, %p1345_p9 }
 0x2c8   : > { %1353 = shalt.err (!%p1350_p13)
}
 0x2c9   : > { %s1408_s11 = smov 256   ;;  %s1409_s18 = smov 16  }
 0x2ca   : > { %1134 = dma.vmem_to_hbm [thread:$0]  (%p1470_p4), %s1669_s21, 4096, %s1667_s27, %s1675_s15, %s1408_s11, %s1408_s11, %s1409_s18  }
 0x2cb PF: > { %p1140_p0 = scmp.ge.s32.totalorder %s1404_s17, 2  ;;  %s974_s19 = sand.u32 1, %s1384_s12  }
 0x2cc   : > { %s975_s23 = scalar_lea.sflag [#allocation3], %s974_s19 }
 0x2cd   : > { %p1137_p1 = pnand %p1140_p0, %p1477_p8 }
 0x2cf   : > { %p1138_p2 = pneg %p1137_p1 }
 0x2d1   : > { %1379 = dma.done.wait (%p1138_p2), %s975_s23, 4096  }
 0x2d2   : > { %1381 = vsyncadd (%p1138_p2), %s975_s23, 4294963200  ;;  %s16_s17 = sadd.s32 1, %s1404_s17   ;;  %s1726_s12 = smov %s1388_s13 }
 0x2d3   : > { %p13_p3 = scmp.ge.s32.totalorder %s16_s17, 4   ;;  %s1727_s13 = smov %s1392_s14 }
 0x2d4   : > { %s1728_s14 = smov %s1483_s25  ;;  %s1729_s15 = smov %s1400_s16 }
 0x2d5   : > { %s1730_s16 = smov %s1732_s20  ;;  %15 = sbr.rel (!%p13_p3) target bundleno = 4 (0x4), region = 73 }
 0x2da   :  { %980 = vsyncpa [#allocation3], 1 }
 0x2db   :  { %982 = vsyncpa [#allocation3 + $0x1], 1 }

// kernel: search_area_feat_extraction.2
= control target key start
LH: loop header
LB: loop body
LE: loop exit
PB: predicated region body
PF: predicated region fallthrough
CT: control target
= control target key end

     0   :  { %s3013_s27 = smov 0   ;;  %s3015_s28 = smov 0   ;;  %s3671_s0 = inlined_call_operand.vmem [shape: f32[2,128,3], index: 0, kind: input, shape index: {}]   ;;  %s3672_s1 = inlined_call_operand.vmem [shape: f32[3,64], index: 1, kind: input, shape index: {}]   ;;  %s3673_s2 = inlined_call_operand.vmem [shape: f32[1,64], index: 2, kind: input, shape index: {}]   ;;  %s3674_s3 = inlined_call_operand.vmem [shape: bf16[64,256], index: 3, kind: input, shape index: {}]   ;;  %s3675_s4 = inlined_call_operand.vmem [shape: f32[1,256], index: 4, kind: input, shape index: {}]   ;;  %s3676_s5 = inlined_call_operand.vmem [shape: bf16[256,768], index: 5, kind: input, shape index: {}]   ;;  %s3677_s6 = inlined_call_operand.vmem [shape: bf16[2,128,256], index: 6, kind: output, shape index: {0}]   ;;  %s3678_s7 = inlined_call_operand.vmem [shape: bf16[2,128,256], index: 7, kind: output, shape index: {1}]   ;;  %s3679_s8 = inlined_call_operand.vmem [shape: bf16[2,128,256], index: 8, kind: output, shape index: {2}]  }
   0x1   :  { %s3017_s29 = smov 0  }
   0x2 LB: > { %s31_s30 = sadd.s32 1, %s2959_s28  ;;  %p2471_p0 = scmp.ge.s32.totalorder %s2963_s29, 1  ;;  %s2963_s29 = sphi %s3017_s29, %s19_s29   ;;  %s2959_s28 = sphi %s3015_s28, %s3681_s28   ;;  %s2955_s27 = sphi %s3013_s27, %s3680_s27  }
   0x3   : > { %p33_p1 = scmp.ge.s32.totalorder %s31_s30, 2  ;;  %p292_p2 = scmp.lt.s32.totalorder %s2963_s29, 3 }
   0x5   : > { %s3683_s30 = smov (%p33_p1, %s31_s30), 0  ;;  %p293_p3 = pnand %p2471_p0, %p292_p2 }
   0x6   : > { %p356_p4 = scmp.lt.s32.totalorder (!%p293_p3), %s2955_s27, 1 }
   0x7   : > { %296 = sbr.rel (%p293_p3) target bundleno = 740 (0x2e4), region = 44 }
   0xc   : > { %v2965_v0 = vmov 2   ;;  %v2966_v1 = vmov 1   ;;  %s3685_s27 = smov (!%p356_p4, %s2955_s27), 1  ;;  %v2967_v2 = vmov 0   ;;  %v2785_v7 = vld [vmem:[%s3674_s3 + $0x34] ss:$8 sps:$4 sm:$0xff]  }
   0xd   : > { %2758 = vset.pattern.permute.xlu0 %v2965_v0  ;;  %2757 = vset.pattern.permute.xlu1 %v2966_v1  ;;  %s3034_s9 = sshll.u32 %s3685_s27, 7  ;;  %v2787_v8 = vld [vmem:[%s3674_s3 + $0x30] ss:$8 sps:$4 sm:$0xff]   ;;  %v2788_v9 = vld [vmem:[%s3674_s3 + $0x24] ss:$8 sps:$4 sm:$0xff]   ;;  %vm825_vm0 = vcmask 523264  }
   0xe   : > { %882 = vmatprep.mubr.bf16.mxu0 %v2967_v2  ;;  %s3040_s12 = scalar_lea.vmem %s3671_s0, %s3034_s9  ;;  %858 = vmatprep.subr.bf16.mxu0 %v2785_v7  ;;  %v2790_v10 = vld [vmem:[%s3674_s3 + $0x20] ss:$8 sps:$4 sm:$0xff]   ;;  %v2791_v11 = vld [vmem:[%s3674_s3 + $0x14] ss:$8 sps:$4 sm:$0xff]   ;;  %v2793_v13 = vld [vmem:[%s3674_s3 + $0x10] ss:$8 sps:$4 sm:$0xff]   ;;  %s3600_s17 = scalar_lea.vmem %s3677_s6, %s3034_s9 }
   0xf   : > { %v399_v3 = vld [vmem:[%s3040_s12] sm:$0xff]  ;;  %v401_v4 = vld [vmem:[%s3040_s12 + $0x10] sm:$0xff]  ;;  %v400_v5 = vld [vmem:[%s3040_s12 + $0x8] sm:$0xff]  ;;  %859 = vmatpush1.bf16.msra.mxu0 %v2787_v8  ;;  %s3606_s20 = scalar_lea.vmem %s3678_s7, %s3034_s9  ;;  %s3644_s23 = scalar_lea.vmem %s3679_s8, %s3034_s9 }
  0x10   : > { %619 = vperm.xlu0 %2758, %v399_v3   ;;  %518 = vperm.xlu1 %2757, %v399_v3   ;;  %v403_v6 = vld [vmem:[%s3040_s12 + $0x20] sm:$0xff]  ;;  %v402_v12 = vld [vmem:[%s3040_s12 + $0x18] sm:$0xff]  ;;  %v404_v15 = vld [vmem:[%s3040_s12 + $0x28] sm:$0xff] }
  0x11   : > { %860 = vmatprep.subr.bf16.mxu0 %v2788_v9  ;;  %v2794_v14 = vld [vmem:[%s3674_s3 + $0x4] ss:$8 sps:$4 sm:$0xff]   ;;  %v2796_v16 = vld [vmem:[%s3674_s3] ss:$8 sps:$4 sm:$0xff]   ;;  %v406_v17 = vld [vmem:[%s3040_s12 + $0x38] sm:$0xff] }
  0x12   : > { %v408_v18 = vld [vmem:[%s3040_s12 + $0x48] sm:$0xff]  ;;  %v410_v19 = vld [vmem:[%s3040_s12 + $0x58] sm:$0xff]  ;;  %v405_v20 = vld [vmem:[%s3040_s12 + $0x30] sm:$0xff] }
  0x13   : > { %861 = vmatpush1.bf16.msra.mxu0 %v2790_v10  ;;  %v407_v21 = vld [vmem:[%s3040_s12 + $0x40] sm:$0xff]  ;;  %v409_v22 = vld [vmem:[%s3040_s12 + $0x50] sm:$0xff]  ;;  %v412_v24 = vld [vmem:[%s3040_s12 + $0x68] sm:$0xff] }
  0x14   : > { %627 = vperm.xlu0 %2758, %v401_v4   ;;  %522 = vperm.xlu1 %2757, %v400_v5   ;;  %v411_v23 = vld [vmem:[%s3040_s12 + $0x60] sm:$0xff]  ;;  %v414_v25 = vld [vmem:[%s3040_s12 + $0x78] sm:$0xff]  ;;  %v413_v26 = vld [vmem:[%s3040_s12 + $0x70] sm:$0xff] }
  0x15   : > { %862 = vmatprep.subr.bf16.mxu0 %v2791_v11  ;;  %v3112_v33 = vld [vmem:[%s3672_s1 + $0x1] ss:$0 sm:$0xff]  ;;  %v3117_v34 = vld [vmem:[%s3672_s1] ss:$0 sm:$0xff]  ;;  %v3122_v35 = vld [vmem:[%s3672_s1 + $0x2] ss:$0 sm:$0xff] }
  0x16   : > { %v3133_v46 = vld [vmem:[%s3673_s2] ss:$0 sm:$0xff]  ;;  %v2797_v61 = vld [vmem:[%s3676_s5 + $0x154] ss:$24 sps:$4 sm:$0xff]  }
  0x17   : > { %863 = vmatpush1.bf16.msra.mxu0 %v2793_v13  ;;  %v2801_v62 = vld [vmem:[%s3676_s5 + $0x15c] ss:$24 sps:$4 sm:$0xff]   ;;  %1587 = vmatprep.subr.bf16.mxu1 %v2797_v61  ;;  %v2807_v8 = vld [vmem:[%s3676_s5 + $0x12c] ss:$24 sps:$4 sm:$0xff]   ;;  %v2808_v9 = vld [vmem:[%s3676_s5 + $0x120] ss:$24 sps:$4 sm:$0xff]  }
  0x18   : > { %635 = vperm.xlu0 %2758, %v403_v6   ;;  %2759 = vset.pattern.permute.xlu1 %v2965_v0 }
  0x19   : > { %623 = vperm.xlu1 %2759, %v400_v5   ;;  %864 = vmatprep.subr.bf16.mxu0 %v2794_v14 }
  0x1b   : > { %865 = vmatpush1.bf16.msra.mxu0 %v2796_v16  ;;  %v2813_v16 = vld [vmem:[%s3676_s5 + $0xfc] ss:$24 sps:$4 sm:$0xff]  }
  0x1c   : > { %2765 = vset.pattern.permute.xlu0 %v2967_v2  ;;  %1700 = vmatprep.subr.bf16.mxu0 %v2801_v62 }
  0x1d   : > { %418 = vperm.xlu0 %2765, %v399_v3   ;;  %2760 = vset.pattern.permute.xlu1 %v2967_v2  ;;  %v2803_v3 = vld [vmem:[%s3676_s5 + $0x124] ss:$24 sps:$4 sm:$0xff]  }
  0x1e   : > { %428 = vperm.xlu1 %2760, %v401_v4  }
  0x21   : > { %423 = vperm.xlu0 %2765, %v400_v5   ;;  %v2799_v5 = vld [vmem:[%s3676_s5 + $0x158] ss:$24 sps:$4 sm:$0xff]  }
  0x22   : > { %2761 = vset.pattern.permute.xlu1 %v2966_v1 }
  0x23   : > { %526 = vperm.xlu1 %2761, %v401_v4  }
  0x25   : > { %433 = vperm.xlu0 %2765, %v402_v12  }
  0x27   : > { %530 = vperm.xlu1 %2761, %v402_v12  }
  0x29   : > { %443 = vperm.xlu0 %2765, %v404_v15  }
  0x2b   : > { %2762 = vset.pattern.permute.xlu1 %v2965_v0 }
  0x2c   : > { %631 = vperm.xlu1 %2762, %v402_v12   ;;  %v2809_v12 = vld [vmem:[%s3676_s5 + $0xf4] ss:$24 sps:$4 sm:$0xff]  }
  0x2d   : > { %453 = vperm.xlu0 %2765, %v406_v17  }
  0x30   : > { %2763 = vset.pattern.permute.xlu1 %v2967_v2 }
  0x31   : > { %438 = vperm.xlu1 %2763, %v403_v6   ;;  %463 = vperm.xlu0 %2765, %v408_v18  }
  0x35   : > { %2764 = vset.pattern.permute.xlu1 %v2966_v1  ;;  %473 = vperm.xlu0 %2765, %v410_v19  }
  0x36   : > { %534 = vperm.xlu1 %2764, %v403_v6  }
  0x39   : > { %2774 = vset.pattern.permute.xlu0 %v2965_v0 }
  0x3a   : > { %538 = vperm.xlu1 %2764, %v404_v15   ;;  %643 = vperm.xlu0 %2774, %v405_v20  }
  0x3e   : > { %2766 = vset.pattern.permute.xlu1 %v2965_v0  ;;  %651 = vperm.xlu0 %2774, %v407_v21  }
  0x3f   : > { %639 = vperm.xlu1 %2766, %v404_v15   ;;  %v2805_v15 = vld [vmem:[%s3676_s5 + $0x128] ss:$24 sps:$4 sm:$0xff]  }
  0x42   : > { %659 = vperm.xlu0 %2774, %v409_v22  }
  0x43   : > { %2767 = vset.pattern.permute.xlu1 %v2967_v2 }
  0x44   : > { %448 = vperm.xlu1 %2767, %v405_v20  }
  0x46   : > { %667 = vperm.xlu0 %2774, %v411_v23  }
  0x48   : > { %2768 = vset.pattern.permute.xlu1 %v2966_v1 }
  0x49   : > { %542 = vperm.xlu1 %2768, %v405_v20   ;;  %v2815_v20 = vld [vmem:[%s3676_s5 + $0xc4] ss:$24 sps:$4 sm:$0xff]  }
  0x4a   : > { %2779 = vset.pattern.permute.xlu0 %v2967_v2 }
  0x4b   : > { %483 = vperm.xlu0 %2779, %v412_v24  }
  0x4d   : > { %546 = vperm.xlu1 %2768, %v406_v17  }
  0x4f   : > { %493 = vperm.xlu0 %2779, %v414_v25  }
  0x51   : > { %2769 = vset.pattern.permute.xlu1 %v2965_v0 }
  0x52   : > { %647 = vperm.xlu1 %2769, %v406_v17   ;;  %v2814_v17 = vld [vmem:[%s3676_s5 + $0xf0] ss:$24 sps:$4 sm:$0xff]  }
  0x53   : > { %2783 = vset.pattern.permute.xlu0 %v2965_v0 }
  0x54   : > { %675 = vperm.xlu0 %2783, %v413_v26  }
  0x56   : > { %2770 = vset.pattern.permute.xlu1 %v2967_v2 }
  0x57   : > { %458 = vperm.xlu1 %2770, %v407_v21  }
  0x5b   : > { %2771 = vset.pattern.permute.xlu1 %v2966_v1 }
  0x5c   : > { %550 = vperm.xlu1 %2771, %v407_v21  }
  0x60   : > { %554 = vperm.xlu1 %2771, %v408_v18  }
  0x64   : > { %2772 = vset.pattern.permute.xlu1 %v2965_v0 }
  0x65   : > { %655 = vperm.xlu1 %2772, %v408_v18  }
  0x69   : > { %2773 = vset.pattern.permute.xlu1 %v2967_v2 }
  0x6a   : > { %468 = vperm.xlu1 %2773, %v409_v22  }
  0x6e   : > { %2775 = vset.pattern.permute.xlu1 %v2966_v1 }
  0x6f   : > { %558 = vperm.xlu1 %2775, %v409_v22  }
  0x73   : > { %562 = vperm.xlu1 %2775, %v410_v19  }
  0x77   : > { %2776 = vset.pattern.permute.xlu1 %v2965_v0 }
  0x78   : > { %663 = vperm.xlu1 %2776, %v410_v19  }
  0x7c   : > { %2777 = vset.pattern.permute.xlu1 %v2967_v2 }
  0x7d   : > { %478 = vperm.xlu1 %2777, %v411_v23  }
  0x81   : > { %2778 = vset.pattern.permute.xlu1 %v2966_v1 }
  0x82   : > { %566 = vperm.xlu1 %2778, %v411_v23  }
  0x86   : > { %570 = vperm.xlu1 %2778, %v412_v24  }
  0x8a   : > { %2780 = vset.pattern.permute.xlu1 %v2965_v0 }
  0x8b   : > { %671 = vperm.xlu1 %2780, %v412_v24   ;;  %v519_v27 = vpop.permute.xlu1 %518  ;;  %v620_v28 = vpop.permute.xlu0 %619  ;;  %v2811_v24 = vld [vmem:[%s3676_s5 + $0xf8] ss:$24 sps:$4 sm:$0xff]  }
  0x8c   : > { %v585_v37 = vmul.f32 %v3112_v33, %v519_v27  ;;  %v686_v38 = vmul.f32 %v3122_v35, %v620_v28  ;;  %v2820_v27 = vld [vmem:[%s3676_s5 + $0xc0] ss:$24 sps:$4 sm:$0xff]  }
  0x8f   : > { %2781 = vset.pattern.permute.xlu1 %v2967_v2  ;;  %v523_v29 = vpop.permute.xlu1 %522  ;;  %v628_v30 = vpop.permute.xlu0 %627 }
  0x90   : > { %488 = vperm.xlu1 %2781, %v413_v26   ;;  %v586_v43 = vmul.f32 %v3112_v33, %v523_v29  ;;  %v688_v55 = vmul.f32 %v3122_v35, %v628_v30  ;;  %v2821_v29 = vld [vmem:[%s3676_s5 + $0x94] ss:$24 sps:$4 sm:$0xff]  }
  0x93   : > { %v3106_v31 = vpop.permute.xlu0 %635 }
  0x94   : > { %2782 = vset.pattern.permute.xlu1 %v2966_v1  ;;  %v624_v32 = vpop.permute.xlu1 %623  ;;  %v2802_v1 = vld [vmem:[%s3676_s5 + $0x150] ss:$24 sps:$4 sm:$0xff]  }
  0x95   : > { %574 = vperm.xlu1 %2782, %v413_v26   ;;  %v687_v48 = vmul.f32 %v3122_v35, %v624_v32  ;;  %1588 = vmatpush1.bf16.msra.mxu1 %v2802_v1  ;;  %v2819_v26 = vld [vmem:[%s3676_s5 + $0xcc] ss:$24 sps:$4 sm:$0xff]  }
  0x96   : > { %1589 = vmatprep.subr.bf16.mxu1 %v2803_v3  ;;  %v2843_v1 = vld [vmem:[%s3676_s5 + $0xc] ss:$24 sps:$4 sm:$0xff]   ;;  %v2844_v3 = vld [vmem:[%s3676_s5] ss:$24 sps:$4 sm:$0xff]  }
  0x98   : > { %v419_v36 = vpop.permute.xlu0 %418 }
  0x99   : > { %v500_v39 = vmul.f32 %v3117_v34, %v419_v36  ;;  %578 = vperm.xlu1 %2782, %v414_v25   ;;  %v429_v40 = vpop.permute.xlu1 %428  ;;  %1590 = vmatpush1.bf16.msra.mxu1 %v2808_v9 }
  0x9a   : > { %v502_v51 = vmul.f32 %v3117_v34, %v429_v40  ;;  %1591 = vmatprep.subr.bf16.mxu1 %v2809_v12  ;;  %v690_v40 = vmul.f32 %v3122_v35, %v3106_v31  ;;  %v2831_v31 = vld [vmem:[%s3676_s5 + $0x6c] ss:$24 sps:$4 sm:$0xff]  }
  0x9b   : > { %v601_v41 = vadd.f32 %v585_v37, %v500_v39  ;;  %v2817_v37 = vld [vmem:[%s3676_s5 + $0xc8] ss:$24 sps:$4 sm:$0xff]  }
  0x9c   : > { %v424_v42 = vpop.permute.xlu0 %423  ;;  %v2826_v39 = vld [vmem:[%s3676_s5 + $0x90] ss:$24 sps:$4 sm:$0xff]  }
  0x9d   : > { %v702_v44 = vadd.f32 %v686_v38, %v601_v41  ;;  %v501_v45 = vmul.f32 %v3117_v34, %v424_v42  ;;  %2784 = vset.pattern.permute.xlu1 %v2965_v0  ;;  %1592 = vmatpush1.bf16.msra.mxu1 %v2814_v17  ;;  %v2825_v38 = vld [vmem:[%s3676_s5 + $0x9c] ss:$24 sps:$4 sm:$0xff]  }
  0x9e   : > { %679 = vperm.xlu1 %2784, %v414_v25   ;;  %v527_v47 = vpop.permute.xlu1 %526  ;;  %1593 = vmatprep.subr.bf16.mxu1 %v2815_v20  ;;  %v2855_v20 = vld [vmem:[%s3676_s5 + $0x2ac] ss:$24 sps:$4 sm:$0xff]  }
  0x9f   : > { %v602_v49 = vadd.f32 %v586_v43, %v501_v45  ;;  %v587_v50 = vmul.f32 %v3112_v33, %v527_v47  ;;  %v725_v52 = vadd.f32 %v3133_v46, %v702_v44  ;;  %v2827_v43 = vld [vmem:[%s3676_s5 + $0x64] ss:$24 sps:$4 sm:$0xff]   ;;  %v2823_v47 = vld [vmem:[%s3676_s5 + $0x98] ss:$24 sps:$4 sm:$0xff]  }
  0xa0   : > { %v434_v54 = vpop.permute.xlu0 %433 }
  0xa1   : > { %v703_v53 = vadd.f32 %v687_v48, %v602_v49  ;;  %v603_v56 = vadd.f32 %v587_v50, %v502_v51  ;;  %v503_v59 = vmul.f32 %v3117_v34, %v434_v54  ;;  %v741_v63 = vmax.f32 %v725_v52, 0.0  ;;  %1594 = vmatpush1.bf16.msra.mxu1 %v2820_v27  ;;  %v2832_v48 = vld [vmem:[%s3676_s5 + $0x60] ss:$24 sps:$4 sm:$0xff]   ;;  %v2833_v51 = vld [vmem:[%s3676_s5 + $0x34] ss:$24 sps:$4 sm:$0xff]  }
  0xa2   : > { %v531_v57 = vpop.permute.xlu1 %530  ;;  %1595 = vmatprep.subr.bf16.mxu1 %v2821_v29  ;;  %v2861_v27 = vld [vmem:[%s3676_s5 + $0x27c] ss:$24 sps:$4 sm:$0xff]  }
  0xa3   : > { %v726_v58 = vadd.f32 %v3133_v46, %v703_v53  ;;  %v588_v60 = vmul.f32 %v3112_v33, %v531_v57  ;;  %v704_v4 = vadd.f32 %v688_v55, %v603_v56  ;;  %v2829_v55 = vld [vmem:[%s3676_s5 + $0x68] ss:$24 sps:$4 sm:$0xff]   ;;  %v2837_v56 = vld [vmem:[%s3676_s5 + $0x3c] ss:$24 sps:$4 sm:$0xff]  }
  0xa4   : > { %v444_v21 = vpop.permute.xlu0 %443  ;;  %v2838_v57 = vld [vmem:[%s3676_s5 + $0x30] ss:$24 sps:$4 sm:$0xff]  }
  0xa5   : > { %v742_v0 = vmax.f32 %v726_v58, 0.0  ;;  %v604_v10 = vadd.f32 %v588_v60, %v503_v59  ;;  %v727_v13 = vadd.f32 %v3133_v46, %v704_v4  ;;  %v505_v44 = vmul.f32 %v3117_v34, %v444_v21  ;;  %1596 = vmatpush1.bf16.msra.mxu1 %v2826_v39  ;;  %v2839_v60 = vld [vmem:[%s3676_s5 + $0x4] ss:$24 sps:$4 sm:$0xff]   ;;  %v2856_v21 = vld [vmem:[%s3676_s5 + $0x2a0] ss:$24 sps:$4 sm:$0xff]  }
  0xa6   : > { %1597 = vmatprep.subr.bf16.mxu1 %v2827_v43 }
  0xa7   : > { %v632_v6 = vpop.permute.xlu1 %631  ;;  %v757_v7 = vpack.c.bf16 %v742_v0, %v741_v63  ;;  %v743_v22 = vmax.f32 %v727_v13, 0.0  ;;  %v2835_v0 = vld [vmem:[%s3676_s5 + $0x38] ss:$24 sps:$4 sm:$0xff]  }
  0xa8   : > { %v689_v11 = vmul.f32 %v3122_v35, %v632_v6  ;;  %v3199_v36 = vpop.permute.xlu0 %453  ;;  %v2845_v6 = vld [vmem:[%s3676_s5 + $0x2d4] ss:$24 sps:$4 sm:$0xff]  }
  0xa9   : > { %2492 = vmatmul.mubr.msk.bf16.vlgmr.msra.gmra.mxu0 %vm825_vm0, %v757_v7  ;;  %1598 = vmatpush1.bf16.msra.mxu1 %v2832_v48  ;;  %v2873_v48 = vld [vmem:[%s3676_s5 + $0x21c] ss:$24 sps:$4 sm:$0xff]  }
  0xaa   : > { %v705_v14 = vadd.f32 %v689_v11, %v604_v10  ;;  %892 = vmatprep.mubr.bf16.mxu0 %v2967_v2  ;;  %1701 = vmatpush1.bf16.msra.mxu0 %v2799_v5  ;;  %v2849_v10 = vld [vmem:[%s3676_s5 + $0x2dc] ss:$24 sps:$4 sm:$0xff]   ;;  %v2850_v11 = vld [vmem:[%s3676_s5 + $0x2d0] ss:$24 sps:$4 sm:$0xff]  }
  0xab   : > { %1702 = vmatprep.subr.bf16.mxu0 %v2807_v8  ;;  %1599 = vmatprep.subr.bf16.mxu1 %v2833_v51  ;;  %v2841_v8 = vld [vmem:[%s3676_s5 + $0x8] ss:$24 sps:$4 sm:$0xff]  }
  0xac   : > { %v728_v18 = vadd.f32 %v3133_v46, %v705_v14  ;;  %v439_v19 = vpop.permute.xlu1 %438  ;;  %v3227_v50 = vpop.permute.xlu0 %463  ;;  %v2851_v14 = vld [vmem:[%s3676_s5 + $0x2a4] ss:$24 sps:$4 sm:$0xff]  }
  0xad   : > { %v504_v32 = vmul.f32 %v3117_v34, %v439_v19  ;;  %1600 = vmatpush1.bf16.msra.mxu1 %v2838_v57 }
  0xae   : > { %v744_v23 = vmax.f32 %v728_v18, 0.0  ;;  %1703 = vmatpush1.bf16.msra.mxu0 %v2805_v15  ;;  %1601 = vmatprep.subr.bf16.mxu1 %v2839_v60  ;;  %v509_v60 = vmul.f32 %v3117_v34, %v3227_v50  ;;  %v2875_v50 = vld [vmem:[%s3676_s5 + $0x1e4] ss:$24 sps:$4 sm:$0xff]  }
  0xaf   : > { %1704 = vmatprep.subr.bf16.mxu0 %v2813_v16  ;;  %v2847_v16 = vld [vmem:[%s3676_s5 + $0x2d8] ss:$24 sps:$4 sm:$0xff]  }
  0xb0   : > { %v758_v25 = vpack.c.bf16 %v744_v23, %v743_v22  ;;  %v3247_v63 = vpop.permute.xlu0 %473  ;;  %v2857_v22 = vld [vmem:[%s3676_s5 + $0x274] ss:$24 sps:$4 sm:$0xff]   ;;  %v507_v23 = vmul.f32 %v3117_v34, %v3199_v36 }
  0xb1   : > { %v535_v28 = vpop.permute.xlu1 %534  ;;  %1602 = vmatpush1.bf16.msra.mxu1 %v2844_v3 }
  0xb2   : > { %v589_v30 = vmul.f32 %v3112_v33, %v535_v28  ;;  %2493 = vmatmul.mubr.msk.bf16.gmra.mxu0 %vm825_vm0, %v758_v25  ;;  %1603 = vmatprep.subr.bf16.mxu1 %v2845_v6  ;;  %v2853_v25 = vld [vmem:[%s3676_s5 + $0x2a8] ss:$24 sps:$4 sm:$0xff]  }
  0xb3   : > { %902 = vmatprep.mubr.bf16.mxu0 %v2967_v2  ;;  %1705 = vmatpush1.bf16.msra.mxu0 %v2811_v24  ;;  %v2862_v28 = vld [vmem:[%s3676_s5 + $0x270] ss:$24 sps:$4 sm:$0xff]  }
  0xb4   : > { %1706 = vmatprep.subr.bf16.mxu0 %v2819_v26  ;;  %v605_v41 = vadd.f32 %v589_v30, %v504_v32  ;;  %v2863_v30 = vld [vmem:[%s3676_s5 + $0x244] ss:$24 sps:$4 sm:$0xff]  }
  0xb5   : > { %v539_v42 = vpop.permute.xlu1 %538  ;;  %v644_v13 = vpop.permute.xlu0 %643  ;;  %1604 = vmatpush2.bf16.msra.mxu1 %v2850_v11  ;;  %v2879_v11 = vld [vmem:[%s3676_s5 + $0x1ec] ss:$24 sps:$4 sm:$0xff]  }
  0xb6   : > { %v590_v45 = vmul.f32 %v3112_v33, %v539_v42  ;;  %v706_v49 = vadd.f32 %v690_v40, %v605_v41  ;;  %v692_v18 = vmul.f32 %v3122_v35, %v644_v13  ;;  %1605 = vmatprep.subr.bf16.mxu1 %v2851_v14  ;;  %v2867_v40 = vld [vmem:[%s3676_s5 + $0x24c] ss:$24 sps:$4 sm:$0xff]   ;;  %v2868_v41 = vld [vmem:[%s3676_s5 + $0x240] ss:$24 sps:$4 sm:$0xff]  }
  0xb7   : > { %1707 = vmatpush1.bf16.msra.mxu0 %v2817_v37  ;;  %v2859_v37 = vld [vmem:[%s3676_s5 + $0x278] ss:$24 sps:$4 sm:$0xff]   ;;  %v2869_v42 = vld [vmem:[%s3676_s5 + $0x214] ss:$24 sps:$4 sm:$0xff]   ;;  %v2877_v13 = vld [vmem:[%s3676_s5 + $0x1e8] ss:$24 sps:$4 sm:$0xff]  }
  0xb8   : > { %1708 = vmatprep.subr.bf16.mxu0 %v2825_v38  ;;  %v606_v53 = vadd.f32 %v590_v45, %v505_v44  ;;  %v729_v58 = vadd.f32 %v3133_v46, %v706_v49  ;;  %v2865_v45 = vld [vmem:[%s3676_s5 + $0x248] ss:$24 sps:$4 sm:$0xff]  }
  0xb9   : > { %1606 = vmatpush2.bf16.msra.mxu1 %v2856_v21  ;;  %v2874_v49 = vld [vmem:[%s3676_s5 + $0x210] ss:$24 sps:$4 sm:$0xff]   ;;  %v2880_v14 = vld [vmem:[%s3676_s5 + $0x1e0] ss:$24 sps:$4 sm:$0xff]  }
  0xba   : > { %v640_v52 = vpop.permute.xlu1 %639  ;;  %v745_v4 = vmax.f32 %v729_v58, 0.0  ;;  %1607 = vmatprep.subr.bf16.mxu1 %v2857_v22 }
  0xbb   : > { %v691_v54 = vmul.f32 %v3122_v35, %v640_v52  ;;  %1709 = vmatpush1.bf16.msra.mxu0 %v2823_v47 }
  0xbc   : > { %1710 = vmatprep.subr.bf16.mxu0 %v2831_v31 }
  0xbd   : > { %v707_v59 = vadd.f32 %v691_v54, %v606_v53  ;;  %1608 = vmatpush2.bf16.msra.mxu1 %v2862_v28  ;;  %v2871_v53 = vld [vmem:[%s3676_s5 + $0x218] ss:$24 sps:$4 sm:$0xff]   ;;  %v511_v28 = vmul.f32 %v3117_v34, %v3247_v63 }
  0xbe   : > { %1609 = vmatprep.subr.bf16.mxu1 %v2863_v30  ;;  %v2889_v30 = vld [vmem:[%s3676_s5 + $0x188] ss:$24 sps:$4 sm:$0xff]  }
  0xbf   : > { %v730_v61 = vadd.f32 %v3133_v46, %v707_v59  ;;  %v449_v62 = vpop.permute.xlu1 %448  ;;  %1711 = vmatpush1.bf16.msra.mxu0 %v2829_v55  ;;  %v652_v55 = vpop.permute.xlu0 %651 }
  0xc0   : > { %1712 = vmatprep.subr.bf16.mxu0 %v2837_v56  ;;  %v506_v15 = vmul.f32 %v3117_v34, %v449_v62  ;;  %v694_v58 = vmul.f32 %v3122_v35, %v652_v55 }
  0xc1   : > { %v746_v5 = vmax.f32 %v730_v61, 0.0  ;;  %1610 = vmatpush2.bf16.msra.mxu1 %v2868_v41 }
  0xc2   : > { %1611 = vmatprep.subr.bf16.mxu1 %v2869_v42 }
  0xc3   : > { %v759_v7 = vpack.c.bf16 %v746_v5, %v745_v4  ;;  %1713 = vmatpush1.bf16.msra.mxu0 %v2835_v0 }
  0xc4   : > { %v543_v9 = vpop.permute.xlu1 %542  ;;  %1714 = vmatprep.subr.bf16.mxu0 %v2843_v1 }
  0xc5   : > { %v591_v12 = vmul.f32 %v3112_v33, %v543_v9  ;;  %2494 = vmatmul.mubr.msk.bf16.gmra.mxu0 %vm825_vm0, %v759_v7  ;;  %1612 = vmatpush2.bf16.msra.mxu1 %v2874_v49 }
  0xc6   : > { %912 = vmatprep.mubr.bf16.mxu0 %v2967_v2  ;;  %1613 = vmatprep.subr.bf16.mxu1 %v2875_v50 }
  0xc7   : > { %1715 = vmatpush1.bf16.msra.mxu0 %v2841_v8  ;;  %v607_v17 = vadd.f32 %v591_v12, %v506_v15 }
  0xc8   : > { %v547_v19 = vpop.permute.xlu1 %546  ;;  %1716 = vmatprep.subr.bf16.mxu0 %v2849_v10 }
  0xc9   : > { %v592_v24 = vmul.f32 %v3112_v33, %v547_v19  ;;  %v708_v26 = vadd.f32 %v692_v18, %v607_v17  ;;  %1614 = vmatpush2.bf16.msra.mxu1 %v2880_v14  ;;  %v2881_v18 = vld [vmem:[%s3676_s5 + $0x1b4] ss:$24 sps:$4 sm:$0xff]  }
  0xca   : > { %v2885_v19 = vld [vmem:[%s3676_s5 + $0x1bc] ss:$24 sps:$4 sm:$0xff]   ;;  %1615 = vmatprep.subr.bf16.mxu1 %v2881_v18 }
  0xcb   : > { %1717 = vmatpush2.bf16.msra.mxu0 %v2847_v16  ;;  %v608_v32 = vadd.f32 %v592_v24, %v507_v23  ;;  %v731_v38 = vadd.f32 %v3133_v46, %v708_v26  ;;  %v660_v16 = vpop.permute.xlu0 %659  ;;  %v2883_v23 = vld [vmem:[%s3676_s5 + $0x1b8] ss:$24 sps:$4 sm:$0xff]   ;;  %v2887_v26 = vld [vmem:[%s3676_s5 + $0x184] ss:$24 sps:$4 sm:$0xff]  }
  0xcc   : > { %1718 = vmatprep.subr.bf16.mxu0 %v2855_v20  ;;  %v696_v21 = vmul.f32 %v3122_v35, %v660_v16  ;;  %v2886_v24 = vld [vmem:[%s3676_s5 + $0x1b0] ss:$24 sps:$4 sm:$0xff]  }
  0xcd   : > { %v648_v29 = vpop.permute.xlu1 %647  ;;  %v747_v47 = vmax.f32 %v731_v38, 0.0  ;;  %1616 = vmatpush2.bf16.msra.mxu1 %v2886_v24 }
  0xce   : > { %v693_v36 = vmul.f32 %v3122_v35, %v648_v29  ;;  %1617 = vmatprep.subr.bf16.mxu1 %v2887_v26 }
  0xcf   : > { %1719 = vmatpush2.bf16.msra.mxu0 %v2853_v25 }
  0xd0   : > { %v709_v39 = vadd.f32 %v693_v36, %v608_v32  ;;  %1720 = vmatprep.subr.bf16.mxu0 %v2861_v27  ;;  %v2891_v27 = vld [vmem:[%s3676_s5 + $0x18c] ss:$24 sps:$4 sm:$0xff]   ;;  %v2892_v32 = vld [vmem:[%s3676_s5 + $0x180] ss:$24 sps:$4 sm:$0xff]  }
  0xd1   : > { %1618 = vmatpush2.bf16.msra.mxu1 %v2892_v32 }
  0xd2   : > { %v732_v43 = vadd.f32 %v3133_v46, %v709_v39  ;;  %v459_v44 = vpop.permute.xlu1 %458 }
  0xd3   : > { %1721 = vmatpush2.bf16.msra.mxu0 %v2859_v37  ;;  %v508_v56 = vmul.f32 %v3117_v34, %v459_v44 }
  0xd4   : > { %v748_v31 = vmax.f32 %v732_v43, 0.0  ;;  %1722 = vmatprep.subr.bf16.mxu0 %v2867_v40 }
  0xd6   : > { %v760_v51 = vpack.c.bf16 %v748_v31, %v747_v47 }
  0xd7   : > { %v551_v52 = vpop.permute.xlu1 %550  ;;  %1723 = vmatpush2.bf16.msra.mxu0 %v2865_v45  ;;  %v668_v45 = vpop.permute.xlu0 %667 }
  0xd8   : > { %v593_v54 = vmul.f32 %v3112_v33, %v551_v52  ;;  %2495 = vmatmul.mubr.msk.bf16.gmra.mxu0 %vm825_vm0, %v760_v51  ;;  %1724 = vmatprep.subr.bf16.mxu0 %v2873_v48 }
  0xd9   : > { %922 = vmatprep.mubr.bf16.mxu0 %v2967_v2 }
  0xda   : > { %v609_v57 = vadd.f32 %v593_v54, %v508_v56 }
  0xdb   : > { %v555_v59 = vpop.permute.xlu1 %554  ;;  %1725 = vmatpush2.bf16.msra.mxu0 %v2871_v53  ;;  %v484_v49 = vpop.permute.xlu0 %483  ;;  %v698_v53 = vmul.f32 %v3122_v35, %v668_v45  ;;  %v2893_v45 = vld [vmem:[%s3676_s5 + $0x160] ss:$24 sps:$4 sm:$0xff]  }
  0xdc   : > { %v594_v61 = vmul.f32 %v3112_v33, %v555_v59  ;;  %v710_v62 = vadd.f32 %v694_v58, %v609_v57  ;;  %1726 = vmatprep.subr.bf16.mxu0 %v2879_v11  ;;  %v513_v54 = vmul.f32 %v3117_v34, %v484_v49 }
  0xde   : > { %v610_v1 = vadd.f32 %v594_v61, %v509_v60  ;;  %v733_v4 = vadd.f32 %v3133_v46, %v710_v62 }
  0xdf   : > { %1727 = vmatpush2.bf16.msra.mxu0 %v2877_v13 }
  0xe0   : > { %v656_v0 = vpop.permute.xlu1 %655  ;;  %v749_v8 = vmax.f32 %v733_v4, 0.0  ;;  %1728 = vmatprep.subr.bf16.mxu0 %v2885_v19 }
  0xe1   : > { %v695_v3 = vmul.f32 %v3122_v35, %v656_v0 }
  0xe3   : > { %v711_v5 = vadd.f32 %v695_v3, %v610_v1  ;;  %1729 = vmatpush2.bf16.msra.mxu0 %v2883_v23  ;;  %v494_v1 = vpop.permute.xlu0 %493 }
  0xe4   : > { %1730 = vmatprep.subr.bf16.mxu0 %v2891_v27  ;;  %v515_v13 = vmul.f32 %v3117_v34, %v494_v1  ;;  %v2904_v1 = vld [vmem:[%s3676_s5 + $0xd4] ss:$24 sps:$4 sm:$0xff]  }
  0xe5   : > { %v734_v6 = vadd.f32 %v3133_v46, %v711_v5  ;;  %v469_v7 = vpop.permute.xlu1 %468 }
  0xe6   : > { %v510_v17 = vmul.f32 %v3117_v34, %v469_v7 }
  0xe7   : > { %v750_v9 = vmax.f32 %v734_v6, 0.0  ;;  %1731 = vmatpush2.bf16.msra.mxu0 %v2889_v30 }
  0xe9   : > { %v761_v10 = vpack.c.bf16 %v750_v9, %v749_v8  ;;  %v676_v8 = vpop.permute.xlu0 %675 }
  0xea   : > { %v559_v12 = vpop.permute.xlu1 %558  ;;  %v700_v50 = vmul.f32 %v3122_v35, %v676_v8 }
  0xeb   : > { %v595_v15 = vmul.f32 %v3112_v33, %v559_v12  ;;  %2496 = vmatmul.mubr.msk.bf16.gmra.mxu0 %vm825_vm0, %v761_v10 }
  0xec   : > { %932 = vmatprep.mubr.bf16.mxu0 %v2967_v2 }
  0xed   : > { %v611_v20 = vadd.f32 %v595_v15, %v510_v17 }
  0xee   : > { %v563_v22 = vpop.permute.xlu1 %562 }
  0xef   : > { %v596_v25 = vmul.f32 %v3112_v33, %v563_v22  ;;  %v712_v29 = vadd.f32 %v696_v21, %v611_v20 }
  0xf1   : > { %v612_v37 = vadd.f32 %v596_v25, %v511_v28  ;;  %v735_v39 = vadd.f32 %v3133_v46, %v712_v29  ;;  %v773_v25 = vld [vmem:[%s3675_s4] sm:$0x3] }
  0xf3   : > { %v664_v36 = vpop.permute.xlu1 %663  ;;  %v751_v42 = vmax.f32 %v735_v39, 0.0 }
  0xf4   : > { %v697_v38 = vmul.f32 %v3122_v35, %v664_v36 }
  0xf6   : > { %v713_v63 = vadd.f32 %v697_v38, %v612_v37 }
  0xf8   : > { %v736_v40 = vadd.f32 %v3133_v46, %v713_v63  ;;  %v479_v41 = vpop.permute.xlu1 %478 }
  0xf9   : > { %v512_v48 = vmul.f32 %v3117_v34, %v479_v41 }
  0xfa   : > { %v752_v43 = vmax.f32 %v736_v40, 0.0 }
  0xfc   : > { %v762_v44 = vpack.c.bf16 %v752_v43, %v751_v42 }
  0xfd   : > { %v567_v47 = vpop.permute.xlu1 %566 }
  0xfe   : > { %v597_v31 = vmul.f32 %v3112_v33, %v567_v47  ;;  %2497 = vmatmul.mubr.msk.bf16.gmra.mxu0 %vm825_vm0, %v762_v44 }
  0xff   : > { %942 = vmatprep.mubr.bf16.mxu0 %v2967_v2 }
 0x100   : > { %v613_v51 = vadd.f32 %v597_v31, %v512_v48  ;;  %v2898_v31 = vld [vmem:[%s3676_s5 + $0x134] ss:$24 sps:$4 sm:$0xff]  }
 0x101   : > { %v571_v52 = vpop.permute.xlu1 %570 }
 0x102   : > { %v598_v55 = vmul.f32 %v3112_v33, %v571_v52  ;;  %v714_v56 = vadd.f32 %v698_v53, %v613_v51 }
 0x104   : > { %v614_v58 = vadd.f32 %v598_v55, %v513_v54  ;;  %v737_v60 = vadd.f32 %v3133_v46, %v714_v56  ;;  %v2896_v54 = vld [vmem:[%s3676_s5 + $0x130] ss:$24 sps:$4 sm:$0xff]   ;;  %v2901_v56 = vld [vmem:[%s3676_s5 + $0x104] ss:$24 sps:$4 sm:$0xff]  }
 0x106   : > { %v672_v57 = vpop.permute.xlu1 %671  ;;  %v753_v3 = vmax.f32 %v737_v60, 0.0 }
 0x107   : > { %v699_v59 = vmul.f32 %v3122_v35, %v672_v57 }
 0x109   : > { %v715_v61 = vadd.f32 %v699_v59, %v614_v58 }
 0x10b   : > { %v738_v62 = vadd.f32 %v3133_v46, %v715_v61  ;;  %v489_v0 = vpop.permute.xlu1 %488 }
 0x10c   : > { %v514_v9 = vmul.f32 %v3117_v34, %v489_v0  ;;  %v775_v34 = vlaneseq }
 0x10d   : > { %v754_v4 = vmax.f32 %v738_v62, 0.0  ;;  %v2899_v62 = vld [vmem:[%s3676_s5 + $0x100] ss:$24 sps:$4 sm:$0xff]  }
 0x10e   : > { %v776_v23 = vshrl.u32 %v775_v34, 7  ;;  %v2919_v34 = vld [vmem:[%s3676_s5 + $0x2e4] ss:$24 sps:$4 sm:$0xff]  }
 0x10f   : > { %v763_v5 = vpack.c.bf16 %v754_v4, %v753_v3  ;;  %v2902_v3 = vld [vmem:[%s3676_s5 + $0xd0] ss:$24 sps:$4 sm:$0xff]   ;;  %v2907_v4 = vld [vmem:[%s3676_s5 + $0xa4] ss:$24 sps:$4 sm:$0xff]  }
 0x110   : > { %v575_v6 = vpop.permute.xlu1 %574  ;;  %v781_v24 = vsub.s32 1, %v776_v23 }
 0x111   : > { %v599_v7 = vmul.f32 %v3112_v33, %v575_v6  ;;  %2498 = vmatmul.mubr.msk.bf16.gmra.mxu0 %vm825_vm0, %v763_v5  ;;  %v2905_v6 = vld [vmem:[%s3676_s5 + $0xa0] ss:$24 sps:$4 sm:$0xff]  }
 0x112   : > { %952 = vmatprep.mubr.bf16.mxu0 %v2967_v2  ;;  %v3417_v26 = vrot.slane %v773_v25, %v781_v24  ;;  %v2922_v24 = vld [vmem:[%s3676_s5 + $0x2b4] ss:$24 sps:$4 sm:$0xff]  }
 0x113   : > { %v615_v10 = vadd.f32 %v599_v7, %v514_v9  ;;  %v2910_v7 = vld [vmem:[%s3676_s5 + $0x74] ss:$24 sps:$4 sm:$0xff]  }
 0x114   : > { %v579_v11 = vpop.permute.xlu1 %578 }
 0x115   : > { %v600_v12 = vmul.f32 %v3112_v33, %v579_v11  ;;  %v716_v14 = vadd.f32 %v700_v50, %v615_v10  ;;  %v2895_v33 = vld [vmem:[%s3676_s5 + $0x164] ss:$24 sps:$4 sm:$0xff]   ;;  %v2908_v10 = vld [vmem:[%s3676_s5 + $0x70] ss:$24 sps:$4 sm:$0xff]  }
 0x116   : > { %2698 = vmatprep.subr.bf16.mxu1 %v2895_v33  ;;  %1813 = vmatprep.subr.bf16.mxu0 %v2895_v33  ;;  %v2914_v33 = vld [vmem:[%s3676_s5 + $0x10] ss:$24 sps:$4 sm:$0xff]  }
 0x117   : > { %v616_v16 = vadd.f32 %v600_v12, %v515_v13  ;;  %v739_v18 = vadd.f32 %v3133_v46, %v716_v14  ;;  %v2913_v12 = vld [vmem:[%s3676_s5 + $0x44] ss:$24 sps:$4 sm:$0xff]  }
 0x119   : > { %v680_v15 = vpop.permute.xlu1 %679  ;;  %v755_v21 = vmax.f32 %v739_v18, 0.0 }
 0x11a   : > { %v701_v17 = vmul.f32 %v3122_v35, %v680_v15  ;;  %v777_v35 = vsub.s32 0, %v776_v23  ;;  %v2917_v23 = vld [vmem:[%s3676_s5 + $0x2e0] ss:$24 sps:$4 sm:$0xff]  }
 0x11c   : > { %v717_v19 = vadd.f32 %v701_v17, %v616_v16  ;;  %v3419_v27 = vrot.slane %v773_v25, %v777_v35  ;;  %v2911_v17 = vld [vmem:[%s3676_s5 + $0x40] ss:$24 sps:$4 sm:$0xff]   ;;  %v2920_v25 = vld [vmem:[%s3676_s5 + $0x2b0] ss:$24 sps:$4 sm:$0xff]  }
 0x11e   : > { %v740_v20 = vadd.f32 %v3133_v46, %v717_v19 }
 0x120   : > { %v756_v2 = vmax.f32 %v740_v20, 0.0 }
 0x122   : > { %v764_v22 = vpack.c.bf16 %v756_v2, %v755_v21  ;;  %v2916_v2 = vld [vmem:[%s3676_s5 + $0x14] ss:$24 sps:$4 sm:$0xff]  }
 0x124   : > { %2499 = vmatmul.mubr.msk.bf16.gmra.mxu0 %vm825_vm0, %v764_v22 }
 0x169   : > { %v884_v46 = vpop.f32.mrf.mxu0 }
 0x16a   : > { %v885_v36 = vadd.f32 %v884_v46, %v3419_v27 }
 0x16b   : > { %v886_v28 = vpop.f32.mrf.mxu0 }
 0x16c   : > { %v887_v30 = vadd.f32 %v886_v28, %v3417_v26  ;;  %v963_v42 = vmax.f32 %v885_v36, 0.0  ;;  %v2925_v28 = vld [vmem:[%s3676_s5 + $0x284] ss:$24 sps:$4 sm:$0xff]   ;;  %v2923_v36 = vld [vmem:[%s3676_s5 + $0x280] ss:$24 sps:$4 sm:$0xff]  }
 0x16d   : > { %v888_v29 = vpop.f32.mrf.mxu0 }
 0x16e   : > { %v889_v32 = vadd.f32 %v888_v29, %v3419_v27  ;;  %v964_v63 = vmax.f32 %v887_v30, 0.0 }
 0x16f   : > { %v890_v37 = vpop.f32.mrf.mxu0 }
 0x170   : > { %v891_v38 = vadd.f32 %v890_v37, %v3417_v26  ;;  %v965_v39 = vmax.f32 %v889_v32, 0.0 }
 0x172   : > { %v966_v40 = vmax.f32 %v891_v38, 0.0  ;;  %v894_v41 = vpop.f32.mrf.mxu0  ;;  %v3430_v47 = vpack.c.bf16 %v965_v39, %v963_v42  ;;  %v2928_v39 = vld [vmem:[%s3676_s5 + $0x254] ss:$24 sps:$4 sm:$0xff]  }
 0x173   : > { %v895_v52 = vadd.f32 %v894_v41, %v3419_v27 }
 0x174   : > { %v3425_v43 = vpack.c.bf16 %v966_v40, %v964_v63  ;;  %v896_v44 = vpop.f32.mrf.mxu0 }
 0x175   : > { %v897_v49 = vadd.f32 %v896_v44, %v3417_v26  ;;  %v967_v60 = vmax.f32 %v895_v52, 0.0  ;;  %v2934_v52 = vld [vmem:[%s3676_s5 + $0x1f4] ss:$24 sps:$4 sm:$0xff]  }
 0x176   : > { %v898_v48 = vpop.f32.mrf.mxu0  ;;  %1619 = vmatprep.mubr.bf16.mxu1 %v3425_v43  ;;  %1732 = vmatprep.mubr.bf16.mxu0 %v3425_v43 }
 0x177   : > { %v899_v51 = vadd.f32 %v898_v48, %v3419_v27  ;;  %1620 = vmatmul.mubr.bf16.vlgmr.msra.gmra.mxu1 %v3430_v47  ;;  %1733 = vmatmul.mubr.bf16.vlgmr.msra.gmra.mxu0 %v3430_v47  ;;  %v968_v58 = vmax.f32 %v897_v49, 0.0  ;;  %v2931_v49 = vld [vmem:[%s3676_s5 + $0x224] ss:$24 sps:$4 sm:$0xff]  }
 0x178   : > { %v900_v53 = vpop.f32.mrf.mxu0  ;;  %2714 = vmatpush1.bf16.msra.mxu1 %v2893_v45  ;;  %1814 = vmatpush1.bf16.msra.mxu0 %v2893_v45 }
 0x179   : > { %v901_v55 = vadd.f32 %v900_v53, %v3417_v26  ;;  %2699 = vmatprep.subr.bf16.mxu1 %v2898_v31  ;;  %1815 = vmatprep.subr.bf16.mxu0 %v2898_v31  ;;  %v969_v57 = vmax.f32 %v899_v51, 0.0  ;;  %v2926_v31 = vld [vmem:[%s3676_s5 + $0x250] ss:$24 sps:$4 sm:$0xff]   ;;  %v2929_v51 = vld [vmem:[%s3676_s5 + $0x220] ss:$24 sps:$4 sm:$0xff]  }
 0x17b   : > { %v970_v59 = vmax.f32 %v901_v55, 0.0  ;;  %v3454_v0 = vpack.c.bf16 %v969_v57, %v967_v60  ;;  %v2937_v55 = vld [vmem:[%s3676_s5 + $0x1c4] ss:$24 sps:$4 sm:$0xff]  }
 0x17c   : > { %2715 = vmatpush1.bf16.msra.mxu1 %v2896_v54  ;;  %1816 = vmatpush1.bf16.msra.mxu0 %v2896_v54  ;;  %v2932_v54 = vld [vmem:[%s3676_s5 + $0x1f0] ss:$24 sps:$4 sm:$0xff]  }
 0x17d   : > { %v3449_v61 = vpack.c.bf16 %v970_v59, %v968_v58  ;;  %2700 = vmatprep.subr.bf16.mxu1 %v2901_v56  ;;  %1817 = vmatprep.subr.bf16.mxu0 %v2901_v56  ;;  %v2935_v58 = vld [vmem:[%s3676_s5 + $0x1c0] ss:$24 sps:$4 sm:$0xff]  }
 0x17f   : > { %1629 = vmatprep.mubr.bf16.mxu1 %v3449_v61  ;;  %1742 = vmatprep.mubr.bf16.mxu0 %v3449_v61 }
 0x180   : > { %1630 = vmatmul.mubr.bf16.gmra.mxu1 %v3454_v0  ;;  %1743 = vmatmul.mubr.bf16.gmra.mxu0 %v3454_v0 }
 0x181   : > { %2716 = vmatpush1.bf16.msra.mxu1 %v2899_v62  ;;  %1818 = vmatpush1.bf16.msra.mxu0 %v2899_v62  ;;  %v2940_v62 = vld [vmem:[%s3676_s5 + $0x194] ss:$24 sps:$4 sm:$0xff]  }
 0x182   : > { %2701 = vmatprep.subr.bf16.mxu1 %v2904_v1  ;;  %1819 = vmatprep.subr.bf16.mxu0 %v2904_v1 }
 0x185   : > { %v904_v5 = vpop.f32.mrf.mxu0  ;;  %2717 = vmatpush1.bf16.msra.mxu1 %v2902_v3  ;;  %1820 = vmatpush1.bf16.msra.mxu0 %v2902_v3 }
 0x186   : > { %2702 = vmatprep.subr.bf16.mxu1 %v2907_v4  ;;  %1821 = vmatprep.subr.bf16.mxu0 %v2907_v4  ;;  %v905_v13 = vadd.f32 %v904_v5, %v3419_v27 }
 0x187   : > { %v906_v8 = vpop.f32.mrf.mxu0 }
 0x188   : > { %v907_v50 = vadd.f32 %v906_v8, %v3417_v26  ;;  %v971_v20 = vmax.f32 %v905_v13, 0.0 }
 0x189   : > { %v908_v9 = vpop.f32.mrf.mxu0  ;;  %2718 = vmatpush1.bf16.msra.mxu1 %v2905_v6  ;;  %1822 = vmatpush1.bf16.msra.mxu0 %v2905_v6  ;;  %v2938_v6 = vld [vmem:[%s3676_s5 + $0x190] ss:$24 sps:$4 sm:$0xff]  }
 0x18a   : > { %v909_v11 = vadd.f32 %v908_v9, %v3419_v27  ;;  %2703 = vmatprep.subr.bf16.mxu1 %v2910_v7  ;;  %1823 = vmatprep.subr.bf16.mxu0 %v2910_v7  ;;  %v972_v18 = vmax.f32 %v907_v50, 0.0 }
 0x18b   : > { %v910_v14 = vpop.f32.mrf.mxu0 }
 0x18c   : > { %v911_v15 = vadd.f32 %v910_v14, %v3417_v26  ;;  %v973_v16 = vmax.f32 %v909_v11, 0.0 }
 0x18d   : > { %2719 = vmatpush1.bf16.msra.mxu1 %v2908_v10  ;;  %1824 = vmatpush1.bf16.msra.mxu0 %v2908_v10 }
 0x18e   : > { %v974_v19 = vmax.f32 %v911_v15, 0.0  ;;  %2704 = vmatprep.subr.bf16.mxu1 %v2913_v12  ;;  %1825 = vmatprep.subr.bf16.mxu0 %v2913_v12  ;;  %v3493_v22 = vpack.c.bf16 %v973_v16, %v971_v20 }
 0x190   : > { %v3488_v21 = vpack.c.bf16 %v974_v19, %v972_v18 }
 0x191   : > { %2720 = vmatpush1.bf16.msra.mxu1 %v2911_v17  ;;  %1826 = vmatpush1.bf16.msra.mxu0 %v2911_v17 }
 0x192   : > { %1639 = vmatprep.mubr.bf16.mxu1 %v3488_v21  ;;  %1752 = vmatprep.mubr.bf16.mxu0 %v3488_v21 }
 0x193   : > { %1640 = vmatmul.mubr.bf16.gmra.mxu1 %v3493_v22  ;;  %1753 = vmatmul.mubr.bf16.gmra.mxu0 %v3493_v22 }
 0x194   : > { %2705 = vmatprep.subr.bf16.mxu1 %v2916_v2  ;;  %1827 = vmatprep.subr.bf16.mxu0 %v2916_v2 }
 0x195   : > { %2721 = vmatpush1.bf16.msra.mxu1 %v2914_v33  ;;  %1828 = vmatpush1.bf16.msra.mxu0 %v2914_v33 }
 0x196   : > { %2706 = vmatprep.subr.bf16.mxu1 %v2919_v34  ;;  %1829 = vmatprep.subr.bf16.mxu0 %v2919_v34 }
 0x198   : > { %v914_v35 = vpop.f32.mrf.mxu0 }
 0x199   : > { %2722 = vmatpush2.bf16.msra.mxu1 %v2917_v23  ;;  %1830 = vmatpush2.bf16.msra.mxu0 %v2917_v23  ;;  %v915_v37 = vadd.f32 %v914_v35, %v3419_v27 }
 0x19a   : > { %v916_v46 = vpop.f32.mrf.mxu0  ;;  %2707 = vmatprep.subr.bf16.mxu1 %v2922_v24  ;;  %1831 = vmatprep.subr.bf16.mxu0 %v2922_v24 }
 0x19b   : > { %v917_v30 = vadd.f32 %v916_v46, %v3417_v26  ;;  %v975_v44 = vmax.f32 %v915_v37, 0.0 }
 0x19c   : > { %v918_v29 = vpop.f32.mrf.mxu0 }
 0x19d   : > { %v919_v32 = vadd.f32 %v918_v29, %v3419_v27  ;;  %2723 = vmatpush2.bf16.msra.mxu1 %v2920_v25  ;;  %1832 = vmatpush2.bf16.msra.mxu0 %v2920_v25  ;;  %v976_v41 = vmax.f32 %v917_v30, 0.0 }
 0x19e   : > { %v920_v38 = vpop.f32.mrf.mxu0  ;;  %2708 = vmatprep.subr.bf16.mxu1 %v2925_v28  ;;  %1833 = vmatprep.subr.bf16.mxu0 %v2925_v28 }
 0x19f   : > { %v921_v63 = vadd.f32 %v920_v38, %v3417_v26  ;;  %v977_v40 = vmax.f32 %v919_v32, 0.0 }
 0x1a1   : > { %v978_v42 = vmax.f32 %v921_v63, 0.0  ;;  %2724 = vmatpush2.bf16.msra.mxu1 %v2923_v36  ;;  %1834 = vmatpush2.bf16.msra.mxu0 %v2923_v36  ;;  %v3532_v48 = vpack.c.bf16 %v977_v40, %v975_v44 }
 0x1a2   : > { %2709 = vmatprep.subr.bf16.mxu1 %v2928_v39  ;;  %1835 = vmatprep.subr.bf16.mxu0 %v2928_v39 }
 0x1a3   : > { %v3527_v45 = vpack.c.bf16 %v978_v42, %v976_v41 }
 0x1a5   : > { %1649 = vmatprep.mubr.bf16.mxu1 %v3527_v45  ;;  %1762 = vmatprep.mubr.bf16.mxu0 %v3527_v45 }
 0x1a6   : > { %1650 = vmatmul.mubr.bf16.gmra.mxu1 %v3532_v48  ;;  %1763 = vmatmul.mubr.bf16.gmra.mxu0 %v3532_v48 }
 0x1a7   : > { %2725 = vmatpush2.bf16.msra.mxu1 %v2926_v31  ;;  %1836 = vmatpush2.bf16.msra.mxu0 %v2926_v31 }
 0x1a8   : > { %2710 = vmatprep.subr.bf16.mxu1 %v2931_v49  ;;  %1837 = vmatprep.subr.bf16.mxu0 %v2931_v49 }
 0x1ab   : > { %v924_v53 = vpop.f32.mrf.mxu0  ;;  %2726 = vmatpush2.bf16.msra.mxu1 %v2929_v51  ;;  %1838 = vmatpush2.bf16.msra.mxu0 %v2929_v51 }
 0x1ac   : > { %2711 = vmatprep.subr.bf16.mxu1 %v2934_v52  ;;  %1839 = vmatprep.subr.bf16.mxu0 %v2934_v52  ;;  %v925_v1 = vadd.f32 %v924_v53, %v3419_v27 }
 0x1ad   : > { %v926_v56 = vpop.f32.mrf.mxu0 }
 0x1ae   : > { %v927_v59 = vadd.f32 %v926_v56, %v3417_v26  ;;  %v979_v9 = vmax.f32 %v925_v1, 0.0 }
 0x1af   : > { %v928_v57 = vpop.f32.mrf.mxu0  ;;  %2727 = vmatpush2.bf16.msra.mxu1 %v2932_v54  ;;  %1840 = vmatpush2.bf16.msra.mxu0 %v2932_v54 }
 0x1b0   : > { %v929_v60 = vadd.f32 %v928_v57, %v3419_v27  ;;  %2712 = vmatprep.subr.bf16.mxu1 %v2937_v55  ;;  %1841 = vmatprep.subr.bf16.mxu0 %v2937_v55  ;;  %v980_v7 = vmax.f32 %v927_v59, 0.0 }
 0x1b1   : > { %v930_v3 = vpop.f32.mrf.mxu0 }
 0x1b2   : > { %v931_v4 = vadd.f32 %v930_v3, %v3417_v26  ;;  %v981_v5 = vmax.f32 %v929_v60, 0.0 }
 0x1b3   : > { %2728 = vmatpush2.bf16.msra.mxu1 %v2935_v58  ;;  %1842 = vmatpush2.bf16.msra.mxu0 %v2935_v58 }
 0x1b4   : > { %v982_v8 = vmax.f32 %v931_v4, 0.0  ;;  %2713 = vmatprep.subr.bf16.mxu1 %v2940_v62  ;;  %1843 = vmatprep.subr.bf16.mxu0 %v2940_v62  ;;  %v3568_v50 = vpack.c.bf16 %v981_v5, %v979_v9 }
 0x1b6   : > { %v3566_v10 = vpack.c.bf16 %v982_v8, %v980_v7 }
 0x1b7   : > { %2729 = vmatpush2.bf16.msra.mxu1 %v2938_v6  ;;  %1844 = vmatpush2.bf16.msra.mxu0 %v2938_v6 }
 0x1b8   : > { %1659 = vmatprep.mubr.bf16.mxu1 %v3566_v10  ;;  %1772 = vmatprep.mubr.bf16.mxu0 %v3566_v10 }
 0x1b9   : > { %1660 = vmatmul.mubr.bf16.gmra.mxu1 %v3568_v50  ;;  %1773 = vmatmul.mubr.bf16.gmra.mxu0 %v3568_v50 }
 0x1be   : > { %v934_v11 = vpop.f32.mrf.mxu0 }
 0x1bf   : > { %v935_v16 = vadd.f32 %v934_v11, %v3419_v27 }
 0x1c0   : > { %v936_v12 = vpop.f32.mrf.mxu0 }
 0x1c1   : > { %v937_v14 = vadd.f32 %v936_v12, %v3417_v26  ;;  %v983_v33 = vmax.f32 %v935_v16, 0.0 }
 0x1c2   : > { %v938_v13 = vpop.f32.mrf.mxu0 }
 0x1c3   : > { %v939_v15 = vadd.f32 %v938_v13, %v3419_v27  ;;  %v984_v20 = vmax.f32 %v937_v14, 0.0 }
 0x1c4   : > { %v940_v17 = vpop.f32.mrf.mxu0 }
 0x1c5   : > { %v941_v18 = vadd.f32 %v940_v17, %v3417_v26  ;;  %v985_v19 = vmax.f32 %v939_v15, 0.0 }
 0x1c7   : > { %v986_v2 = vmax.f32 %v941_v18, 0.0  ;;  %v1005_v23 = vpack.c.bf16 %v985_v19, %v983_v33 }
 0x1c9   : > { %v1006_v34 = vpack.c.bf16 %v986_v2, %v984_v20 }
 0x1cb   : > { %1669 = vmatprep.mubr.bf16.mxu1 %v1006_v34  ;;  %1782 = vmatprep.mubr.bf16.mxu0 %v1006_v34 }
 0x1cc   : > { %1670 = vmatmul.mubr.bf16.gmra.mxu1 %v1005_v23  ;;  %1783 = vmatmul.mubr.bf16.gmra.mxu0 %v1005_v23 }
 0x1d1   : > { %v944_v24 = vpop.f32.mrf.mxu0 }
 0x1d2   : > { %v945_v29 = vadd.f32 %v944_v24, %v3419_v27 }
 0x1d3   : > { %v946_v35 = vpop.f32.mrf.mxu0 }
 0x1d4   : > { %v947_v46 = vadd.f32 %v946_v35, %v3417_v26  ;;  %v987_v39 = vmax.f32 %v945_v29, 0.0 }
 0x1d5   : > { %v948_v25 = vpop.f32.mrf.mxu0 }
 0x1d6   : > { %v949_v28 = vadd.f32 %v948_v25, %v3419_v27  ;;  %v988_v37 = vmax.f32 %v947_v46, 0.0 }
 0x1d7   : > { %v950_v30 = vpop.f32.mrf.mxu0 }
 0x1d8   : > { %v951_v32 = vadd.f32 %v950_v30, %v3417_v26  ;;  %v989_v36 = vmax.f32 %v949_v28, 0.0 }
 0x1da   : > { %v990_v38 = vmax.f32 %v951_v32, 0.0  ;;  %v1007_v40 = vpack.c.bf16 %v989_v36, %v987_v39 }
 0x1dc   : > { %v1008_v63 = vpack.c.bf16 %v990_v38, %v988_v37 }
 0x1de   : > { %1679 = vmatprep.mubr.bf16.mxu1 %v1008_v63  ;;  %1792 = vmatprep.mubr.bf16.mxu0 %v1008_v63 }
 0x1df   : > { %1680 = vmatmul.mubr.bf16.gmra.mxu1 %v1007_v40  ;;  %1793 = vmatmul.mubr.bf16.gmra.mxu0 %v1007_v40 }
 0x1e4   : > { %v954_v41 = vpop.f32.mrf.mxu0 }
 0x1e5   : > { %v955_v51 = vadd.f32 %v954_v41, %v3419_v27 }
 0x1e6   : > { %v956_v42 = vpop.f32.mrf.mxu0 }
 0x1e7   : > { %v957_v31 = vadd.f32 %v956_v42, %v3417_v26  ;;  %v991_v57 = vmax.f32 %v955_v51, 0.0 }
 0x1e8   : > { %v958_v44 = vpop.f32.mrf.mxu0 }
 0x1e9   : > { %v959_v49 = vadd.f32 %v958_v44, %v3419_v27  ;;  %v992_v55 = vmax.f32 %v957_v31, 0.0 }
 0x1ea   : > { %v960_v52 = vpop.f32.mrf.mxu0 }
 0x1eb   : > { %v961_v53 = vadd.f32 %v960_v52, %v3417_v26  ;;  %v993_v54 = vmax.f32 %v959_v49, 0.0 }
 0x1ed   : > { %v994_v56 = vmax.f32 %v961_v53, 0.0  ;;  %v1009_v59 = vpack.c.bf16 %v993_v54, %v991_v57 }
 0x1ef   : > { %v1010_v58 = vpack.c.bf16 %v994_v56, %v992_v55 }
 0x1f1   : > { %1689 = vmatprep.mubr.bf16.mxu1 %v1010_v58  ;;  %1802 = vmatprep.mubr.bf16.mxu0 %v1010_v58 }
 0x1f2   : > { %1690 = vmatmul.mubr.bf16.gmra.mxu1 %v1009_v59  ;;  %1803 = vmatmul.mubr.bf16.gmra.mxu0 %v1009_v59 }
 0x1f3   : > { %1845 = vmatprep.mubr.bf16.mxu0 %v3425_v43  ;;  %1875 = vmatprep.mubr.bf16.mxu1 %v3527_v45 }
 0x1fa   : > { %1846 = vmatmul.mubr.bf16.vlgmr.msra.gmra.mxu0 %v3430_v47  ;;  %1876 = vmatmul.mubr.bf16.vlgmr.msra.gmra.mxu1 %v3532_v48 }
 0x1fb   : > { %1855 = vmatprep.mubr.bf16.mxu0 %v3449_v61  ;;  %1885 = vmatprep.mubr.bf16.mxu1 %v3566_v10 }
 0x202   : > { %1856 = vmatmul.mubr.bf16.gmra.mxu0 %v3454_v0  ;;  %1886 = vmatmul.mubr.bf16.gmra.mxu1 %v3568_v50 }
 0x203   : > { %1865 = vmatprep.mubr.bf16.mxu0 %v3488_v21  ;;  %1895 = vmatprep.mubr.bf16.mxu1 %v1006_v34 }
 0x20a   : > { %1866 = vmatmul.mubr.bf16.gmra.mxu0 %v3493_v22  ;;  %1896 = vmatmul.mubr.bf16.gmra.mxu1 %v1005_v23 }
 0x20b   : > { %1905 = vmatprep.mubr.bf16.mxu1 %v1008_v63 }
 0x212   : > { %1906 = vmatmul.mubr.bf16.gmra.mxu1 %v1007_v40 }
 0x213   : > { %1915 = vmatprep.mubr.bf16.mxu1 %v1010_v58 }
 0x21a   : > { %1916 = vmatmul.mubr.bf16.gmra.mxu1 %v1009_v59 }
 0x237   : > { %v1621_v26 = vpop.f32.mrf.mxu1  ;;  %v1734_v27 = vpop.f32.mrf.mxu0 }
 0x239   : > { %v1623_v43 = vpop.f32.mrf.mxu1  ;;  %v1736_v47 = vpop.f32.mrf.mxu0 }
 0x23a   : > { %v2650_v61 = vpack.c.bf16 %v1623_v43, %v1621_v26  ;;  %v2666_v0 = vpack.c.bf16 %v1736_v47, %v1734_v27 }
 0x23b   : > { %v1625_v21 = vpop.f32.mrf.mxu1  ;;  %v1738_v22 = vpop.f32.mrf.mxu0 }
 0x23c   : > { %2022 = vst [vmem:[%s3600_s17] sm:$0xff] %v2650_v61  ;;  %2134 = vst [vmem:[%s3606_s20] sm:$0xff] %v2666_v0 }
 0x23d   : > { %v1627_v45 = vpop.f32.mrf.mxu1  ;;  %v1740_v48 = vpop.f32.mrf.mxu0 }
 0x23e   : > { %v2651_v60 = vpack.c.bf16 %v1627_v45, %v1625_v21  ;;  %v2667_v62 = vpack.c.bf16 %v1740_v48, %v1738_v22 }
 0x240   : > { %2023 = vst [vmem:[%s3600_s17 + $0x8] sm:$0xff] %v2651_v60  ;;  %2135 = vst [vmem:[%s3606_s20 + $0x8] sm:$0xff] %v2667_v62  ;;  %v1631_v1 = vpop.f32.mrf.mxu1  ;;  %v1744_v3 = vpop.f32.mrf.mxu0 }
 0x242   : > { %v1633_v4 = vpop.f32.mrf.mxu1  ;;  %v1746_v5 = vpop.f32.mrf.mxu0 }
 0x243   : > { %v2652_v6 = vpack.c.bf16 %v1633_v4, %v1631_v1  ;;  %v2668_v7 = vpack.c.bf16 %v1746_v5, %v1744_v3 }
 0x244   : > { %v1635_v8 = vpop.f32.mrf.mxu1  ;;  %v1748_v9 = vpop.f32.mrf.mxu0 }
 0x245   : > { %2024 = vst [vmem:[%s3600_s17 + $0x10] sm:$0xff] %v2652_v6  ;;  %2136 = vst [vmem:[%s3606_s20 + $0x10] sm:$0xff] %v2668_v7 }
 0x246   : > { %v1637_v10 = vpop.f32.mrf.mxu1  ;;  %v1750_v50 = vpop.f32.mrf.mxu0 }
 0x247   : > { %v2653_v11 = vpack.c.bf16 %v1637_v10, %v1635_v8  ;;  %v2669_v12 = vpack.c.bf16 %v1750_v50, %v1748_v9 }
 0x249   : > { %2025 = vst [vmem:[%s3600_s17 + $0x18] sm:$0xff] %v2653_v11  ;;  %2137 = vst [vmem:[%s3606_s20 + $0x18] sm:$0xff] %v2669_v12 }
 0x253   : > { %v1641_v13 = vpop.f32.mrf.mxu1  ;;  %v1754_v14 = vpop.f32.mrf.mxu0 }
 0x255   : > { %v1643_v15 = vpop.f32.mrf.mxu1  ;;  %v1756_v16 = vpop.f32.mrf.mxu0 }
 0x256   : > { %v2654_v17 = vpack.c.bf16 %v1643_v15, %v1641_v13  ;;  %v2670_v18 = vpack.c.bf16 %v1756_v16, %v1754_v14 }
 0x257   : > { %v1645_v19 = vpop.f32.mrf.mxu1  ;;  %v1758_v20 = vpop.f32.mrf.mxu0 }
 0x258   : > { %2026 = vst [vmem:[%s3600_s17 + $0x20] sm:$0xff] %v2654_v17  ;;  %2138 = vst [vmem:[%s3606_s20 + $0x20] sm:$0xff] %v2670_v18 }
 0x259   : > { %v1647_v2 = vpop.f32.mrf.mxu1  ;;  %v1760_v33 = vpop.f32.mrf.mxu0 }
 0x25a   : > { %v2655_v34 = vpack.c.bf16 %v1647_v2, %v1645_v19  ;;  %v2671_v23 = vpack.c.bf16 %v1760_v33, %v1758_v20 }
 0x25c   : > { %2027 = vst [vmem:[%s3600_s17 + $0x28] sm:$0xff] %v2655_v34  ;;  %2139 = vst [vmem:[%s3606_s20 + $0x28] sm:$0xff] %v2671_v23 }
 0x266   : > { %v1651_v24 = vpop.f32.mrf.mxu1  ;;  %v1764_v35 = vpop.f32.mrf.mxu0 }
 0x268   : > { %v1653_v25 = vpop.f32.mrf.mxu1  ;;  %v1766_v46 = vpop.f32.mrf.mxu0 }
 0x269   : > { %v2656_v28 = vpack.c.bf16 %v1653_v25, %v1651_v24  ;;  %v2672_v29 = vpack.c.bf16 %v1766_v46, %v1764_v35 }
 0x26a   : > { %v1655_v30 = vpop.f32.mrf.mxu1  ;;  %v1768_v32 = vpop.f32.mrf.mxu0 }
 0x26b   : > { %2028 = vst [vmem:[%s3600_s17 + $0x30] sm:$0xff] %v2656_v28  ;;  %2140 = vst [vmem:[%s3606_s20 + $0x30] sm:$0xff] %v2672_v29 }
 0x26c   : > { %v1657_v36 = vpop.f32.mrf.mxu1  ;;  %v1770_v37 = vpop.f32.mrf.mxu0 }
 0x26d   : > { %v2657_v38 = vpack.c.bf16 %v1657_v36, %v1655_v30  ;;  %v2673_v39 = vpack.c.bf16 %v1770_v37, %v1768_v32 }
 0x26f   : > { %2029 = vst [vmem:[%s3600_s17 + $0x38] sm:$0xff] %v2657_v38  ;;  %2141 = vst [vmem:[%s3606_s20 + $0x38] sm:$0xff] %v2673_v39 }
 0x279   : > { %v1661_v63 = vpop.f32.mrf.mxu1  ;;  %v1774_v40 = vpop.f32.mrf.mxu0 }
 0x27b   : > { %v1663_v41 = vpop.f32.mrf.mxu1  ;;  %v1776_v42 = vpop.f32.mrf.mxu0 }
 0x27c   : > { %v2658_v44 = vpack.c.bf16 %v1663_v41, %v1661_v63  ;;  %v2674_v31 = vpack.c.bf16 %v1776_v42, %v1774_v40 }
 0x27d   : > { %v1665_v49 = vpop.f32.mrf.mxu1  ;;  %v1778_v51 = vpop.f32.mrf.mxu0 }
 0x27e   : > { %2030 = vst [vmem:[%s3600_s17 + $0x40] sm:$0xff] %v2658_v44  ;;  %2142 = vst [vmem:[%s3606_s20 + $0x40] sm:$0xff] %v2674_v31 }
 0x27f   : > { %v1667_v52 = vpop.f32.mrf.mxu1  ;;  %v1780_v53 = vpop.f32.mrf.mxu0 }
 0x280   : > { %v2659_v54 = vpack.c.bf16 %v1667_v52, %v1665_v49  ;;  %v2675_v55 = vpack.c.bf16 %v1780_v53, %v1778_v51 }
 0x282   : > { %2031 = vst [vmem:[%s3600_s17 + $0x48] sm:$0xff] %v2659_v54  ;;  %2143 = vst [vmem:[%s3606_s20 + $0x48] sm:$0xff] %v2675_v55 }
 0x28c   : > { %v1671_v56 = vpop.f32.mrf.mxu1  ;;  %v1784_v57 = vpop.f32.mrf.mxu0 }
 0x28e   : > { %v1673_v58 = vpop.f32.mrf.mxu1  ;;  %v1786_v59 = vpop.f32.mrf.mxu0 }
 0x28f   : > { %v2660_v26 = vpack.c.bf16 %v1673_v58, %v1671_v56  ;;  %v2676_v27 = vpack.c.bf16 %v1786_v59, %v1784_v57 }
 0x290   : > { %v1675_v43 = vpop.f32.mrf.mxu1  ;;  %v1788_v47 = vpop.f32.mrf.mxu0 }
 0x291   : > { %2032 = vst [vmem:[%s3600_s17 + $0x50] sm:$0xff] %v2660_v26  ;;  %2144 = vst [vmem:[%s3606_s20 + $0x50] sm:$0xff] %v2676_v27 }
 0x292   : > { %v1677_v61 = vpop.f32.mrf.mxu1  ;;  %v1790_v0 = vpop.f32.mrf.mxu0 }
 0x293   : > { %v2661_v21 = vpack.c.bf16 %v1677_v61, %v1675_v43  ;;  %v2677_v22 = vpack.c.bf16 %v1790_v0, %v1788_v47 }
 0x295   : > { %2033 = vst [vmem:[%s3600_s17 + $0x58] sm:$0xff] %v2661_v21  ;;  %2145 = vst [vmem:[%s3606_s20 + $0x58] sm:$0xff] %v2677_v22 }
 0x29f   : > { %v1681_v45 = vpop.f32.mrf.mxu1  ;;  %v1794_v48 = vpop.f32.mrf.mxu0 }
 0x2a1   : > { %v1683_v60 = vpop.f32.mrf.mxu1  ;;  %v1796_v62 = vpop.f32.mrf.mxu0 }
 0x2a2   : > { %v2662_v1 = vpack.c.bf16 %v1683_v60, %v1681_v45  ;;  %v2678_v3 = vpack.c.bf16 %v1796_v62, %v1794_v48 }
 0x2a3   : > { %v1685_v4 = vpop.f32.mrf.mxu1  ;;  %v1798_v5 = vpop.f32.mrf.mxu0 }
 0x2a4   : > { %2034 = vst [vmem:[%s3600_s17 + $0x60] sm:$0xff] %v2662_v1  ;;  %2146 = vst [vmem:[%s3606_s20 + $0x60] sm:$0xff] %v2678_v3 }
 0x2a5   : > { %v1687_v6 = vpop.f32.mrf.mxu1  ;;  %v1800_v7 = vpop.f32.mrf.mxu0 }
 0x2a6   : > { %v2663_v8 = vpack.c.bf16 %v1687_v6, %v1685_v4  ;;  %v2679_v9 = vpack.c.bf16 %v1800_v7, %v1798_v5 }
 0x2a8   : > { %2035 = vst [vmem:[%s3600_s17 + $0x68] sm:$0xff] %v2663_v8  ;;  %2147 = vst [vmem:[%s3606_s20 + $0x68] sm:$0xff] %v2679_v9 }
 0x2b2   : > { %v1691_v10 = vpop.f32.mrf.mxu1  ;;  %v1804_v50 = vpop.f32.mrf.mxu0 }
 0x2b4   : > { %v1693_v11 = vpop.f32.mrf.mxu1  ;;  %v1806_v12 = vpop.f32.mrf.mxu0 }
 0x2b5   : > { %v2664_v13 = vpack.c.bf16 %v1693_v11, %v1691_v10  ;;  %v2680_v14 = vpack.c.bf16 %v1806_v12, %v1804_v50 }
 0x2b6   : > { %v1695_v15 = vpop.f32.mrf.mxu1  ;;  %v1808_v16 = vpop.f32.mrf.mxu0 }
 0x2b7   : > { %2036 = vst [vmem:[%s3600_s17 + $0x70] sm:$0xff] %v2664_v13  ;;  %2148 = vst [vmem:[%s3606_s20 + $0x70] sm:$0xff] %v2680_v14 }
 0x2b8   : > { %v1697_v17 = vpop.f32.mrf.mxu1  ;;  %v1810_v18 = vpop.f32.mrf.mxu0 }
 0x2b9   : > { %v2665_v19 = vpack.c.bf16 %v1697_v17, %v1695_v15  ;;  %v2681_v20 = vpack.c.bf16 %v1810_v18, %v1808_v16 }
 0x2ba   : > { %v1847_v2 = vpop.f32.mrf.mxu0  ;;  %v1877_v33 = vpop.f32.mrf.mxu1 }
 0x2bb   : > { %2037 = vst [vmem:[%s3600_s17 + $0x78] sm:$0xff] %v2665_v19  ;;  %2149 = vst [vmem:[%s3606_s20 + $0x78] sm:$0xff] %v2681_v20 }
 0x2bc   : > { %v1849_v34 = vpop.f32.mrf.mxu0  ;;  %v1879_v23 = vpop.f32.mrf.mxu1 }
 0x2bd   : > { %v2682_v24 = vpack.c.bf16 %v1849_v34, %v1847_v2  ;;  %v2688_v35 = vpack.c.bf16 %v1879_v23, %v1877_v33 }
 0x2be   : > { %v1851_v25 = vpop.f32.mrf.mxu0  ;;  %v1881_v46 = vpop.f32.mrf.mxu1 }
 0x2bf   : > { %2246 = vst [vmem:[%s3644_s23] sm:$0xff] %v2682_v24  ;;  %2252 = vst [vmem:[%s3644_s23 + $0x30] sm:$0xff] %v2688_v35 }
 0x2c0   : > { %v1853_v28 = vpop.f32.mrf.mxu0  ;;  %v1883_v29 = vpop.f32.mrf.mxu1 }
 0x2c1   : > { %v2683_v30 = vpack.c.bf16 %v1853_v28, %v1851_v25  ;;  %v2689_v32 = vpack.c.bf16 %v1883_v29, %v1881_v46 }
 0x2c2   : > { %v1857_v36 = vpop.f32.mrf.mxu0  ;;  %v1887_v37 = vpop.f32.mrf.mxu1 }
 0x2c3   : > { %2247 = vst [vmem:[%s3644_s23 + $0x8] sm:$0xff] %v2683_v30  ;;  %2253 = vst [vmem:[%s3644_s23 + $0x38] sm:$0xff] %v2689_v32 }
 0x2c4   : > { %v1859_v38 = vpop.f32.mrf.mxu0  ;;  %v1889_v39 = vpop.f32.mrf.mxu1 }
 0x2c5   : > { %v2684_v63 = vpack.c.bf16 %v1859_v38, %v1857_v36  ;;  %v2690_v40 = vpack.c.bf16 %v1889_v39, %v1887_v37 }
 0x2c6   : > { %v1861_v41 = vpop.f32.mrf.mxu0  ;;  %v1891_v42 = vpop.f32.mrf.mxu1 }
 0x2c7   : > { %2248 = vst [vmem:[%s3644_s23 + $0x10] sm:$0xff] %v2684_v63  ;;  %2254 = vst [vmem:[%s3644_s23 + $0x40] sm:$0xff] %v2690_v40 }
 0x2c8   : > { %v1863_v44 = vpop.f32.mrf.mxu0  ;;  %v1893_v31 = vpop.f32.mrf.mxu1 }
 0x2c9   : > { %v2685_v49 = vpack.c.bf16 %v1863_v44, %v1861_v41  ;;  %v2691_v51 = vpack.c.bf16 %v1893_v31, %v1891_v42 }
 0x2ca   : > { %v1867_v52 = vpop.f32.mrf.mxu0  ;;  %v1897_v53 = vpop.f32.mrf.mxu1 }
 0x2cb   : > { %2249 = vst [vmem:[%s3644_s23 + $0x18] sm:$0xff] %v2685_v49  ;;  %2255 = vst [vmem:[%s3644_s23 + $0x48] sm:$0xff] %v2691_v51 }
 0x2cc   : > { %v1869_v54 = vpop.f32.mrf.mxu0  ;;  %v1899_v55 = vpop.f32.mrf.mxu1 }
 0x2cd   : > { %v2686_v56 = vpack.c.bf16 %v1869_v54, %v1867_v52  ;;  %v2692_v57 = vpack.c.bf16 %v1899_v55, %v1897_v53 }
 0x2ce   : > { %v1871_v58 = vpop.f32.mrf.mxu0  ;;  %v1901_v59 = vpop.f32.mrf.mxu1 }
 0x2cf   : > { %2250 = vst [vmem:[%s3644_s23 + $0x20] sm:$0xff] %v2686_v56  ;;  %2256 = vst [vmem:[%s3644_s23 + $0x50] sm:$0xff] %v2692_v57 }
 0x2d0   : > { %v1873_v26 = vpop.f32.mrf.mxu0  ;;  %v1903_v27 = vpop.f32.mrf.mxu1 }
 0x2d1   : > { %v2687_v43 = vpack.c.bf16 %v1873_v26, %v1871_v58  ;;  %v2693_v47 = vpack.c.bf16 %v1903_v27, %v1901_v59 }
 0x2d2   : > { %v1907_v61 = vpop.f32.mrf.mxu1 }
 0x2d3   : > { %2251 = vst [vmem:[%s3644_s23 + $0x28] sm:$0xff] %v2687_v43  ;;  %2257 = vst [vmem:[%s3644_s23 + $0x58] sm:$0xff] %v2693_v47 }
 0x2d4   : > { %v1909_v0 = vpop.f32.mrf.mxu1 }
 0x2d5   : > { %v2694_v21 = vpack.c.bf16 %v1909_v0, %v1907_v61 }
 0x2d6   : > { %v1911_v22 = vpop.f32.mrf.mxu1 }
 0x2d7   : > { %2258 = vst [vmem:[%s3644_s23 + $0x60] sm:$0xff] %v2694_v21 }
 0x2d8   : > { %v1913_v45 = vpop.f32.mrf.mxu1 }
 0x2d9   : > { %v2695_v48 = vpack.c.bf16 %v1913_v45, %v1911_v22 }
 0x2da   : > { %v1917_v60 = vpop.f32.mrf.mxu1 }
 0x2db   : > { %2259 = vst [vmem:[%s3644_s23 + $0x68] sm:$0xff] %v2695_v48 }
 0x2dc   : > { %v1919_v62 = vpop.f32.mrf.mxu1 }
 0x2dd   : > { %v2696_v1 = vpack.c.bf16 %v1919_v62, %v1917_v60 }
 0x2de   : > { %v1921_v3 = vpop.f32.mrf.mxu1 }
 0x2df   : > { %2260 = vst [vmem:[%s3644_s23 + $0x70] sm:$0xff] %v2696_v1 }
 0x2e0   : > { %v1923_v4 = vpop.f32.mrf.mxu1 }
 0x2e1   : > { %v2697_v5 = vpack.c.bf16 %v1923_v4, %v1921_v3 }
 0x2e3   : > { %2261 = vst [vmem:[%s3644_s23 + $0x78] sm:$0xff] %v2697_v5 }
 0x2e4 PF: > { %s19_s29 = sadd.s32 1, %s2963_s29   ;;  %s3680_s27 = smov %s2959_s28 }
 0x2e5   : > { %p16_p5 = scmp.ge.s32.totalorder %s19_s29, 4   ;;  %s3681_s28 = smov %s3683_s30 }
 0x2e7   :  { %18 = sbr.rel (!%p16_p5) target bundleno = 2 (0x2), region = 98 }

</bundles_post_ra>
